<compile_context>
chip_gen: v7x
topology: tpu7x:2x2x1
jax: 0.10.0
libtpu: 0.0.40
codegen_flags: <defaults>
</compile_context>

<pallas_src>
import functools
import math

import numpy as np
import jax
import jax.numpy as jnp
from jax.experimental import pallas as pl
from jax.experimental.pallas import tpu as pltpu


def _dgat_kernel(ef_ref, xg_ref, shift_ref, oh_ref,
                 x_ref,
                 w1s_ref, b1s_ref, w2sa_ref, b2sa_ref, expand_s_ref, coll_s_ref,
                 w1d_ref, b1d_ref, w2d_ref, b2d_ref, expand_ref, coll_ref,
                 amapj_ref, headt_ref, selfw_ref, bias_ref,
                 out_ref, den_acc,
                 *, negative_slope):
    f32 = jnp.float32
    bf16 = jnp.bfloat16
    eb = pl.program_id(0)
    last = pl.num_programs(0) - 1

    # ---- init: self-loop messages.  With the per-segment shift equal to the self
    #      logit, the self softmax weight is exp(0) == 1 exactly.
    @pl.when(eb == 0)
    def _():
        x_b = x_ref[...].astype(bf16)
        out_ref[...] = jnp.dot(x_b, selfw_ref[...], preferred_element_type=f32)  # (N, HF)
        den_acc[...] = jnp.ones_like(den_acc)                                    # (N, H)

    ef = ef_ref[...]                 # (TE, Fe) f32
    xg = xg_ref[...]                 # (TE, Fin) f32 = x[edge_index[1]] block
    ef_b = ef.astype(bf16)
    xg_b = xg.astype(bf16)

    # ---- dst hyper-network: Linear -> ReLU -> Linear (bf16 MXU feeds, f32 acc) ----
    h_d = jnp.maximum(
        jnp.dot(ef_b, w1d_ref[...], preferred_element_type=f32) + b1d_ref[...], 0.0)
    wflat_d = (jnp.dot(h_d.astype(bf16), w2d_ref[...], preferred_element_type=f32)
               + b2d_ref[...])                                                   # (TE, K)

    # per-edge bmm as lane-dense matmuls: replicate xg over the (Fin, HF) layout,
    # multiply, collapse the Fin groups -> x_j.  `weighted` is read only ONCE.
    xg_rep = jnp.dot(xg_b, expand_ref[...], preferred_element_type=f32)          # (TE, K)
    weighted = wflat_d * xg_rep
    x_j = jnp.dot(weighted.astype(bf16), coll_ref[...],
                  preferred_element_type=f32)                                    # (TE, HF)

    # ---- src hyper-network: att_i folded into its second layer in the wrapper, so
    #      the src path only produces the (TE, Fin*H) attention contribution ----
    h_s = jnp.maximum(
        jnp.dot(ef_b, w1s_ref[...], preferred_element_type=f32) + b1s_ref[...], 0.0)
    srcatt = jnp.dot(h_s, w2sa_ref[...], preferred_element_type=f32) + b2sa_ref[...]   # (TE, Fin*H)
    xg_rep_s = jnp.dot(xg, expand_s_ref[...], preferred_element_type=f32)              # (TE, Fin*H)
    raw_src = jnp.dot(srcatt * xg_rep_s, coll_s_ref[...],
                      preferred_element_type=f32)                                # (TE, H)

    # dst attention logit recovered from x_j (att_j folded into a tiny head map)
    raw_dst = jnp.dot(x_j, amapj_ref[...], preferred_element_type=f32)           # (TE, H)

    raw = raw_src + raw_dst
    raw = jnp.where(raw >= 0, raw, negative_slope * raw)                         # leaky_relu
    # Per-segment shift = destination node's post-leaky self logit: exact (softmax is
    # shift-invariant within a segment) and keeps the denominator >= 1.
    expv = jnp.exp(raw - shift_ref[...])                                         # (TE, H)
    expv_hf = jnp.dot(expv, headt_ref[...], preferred_element_type=f32)          # (TE, HF)
    msg = x_j * expv_hf                                                          # (TE, HF)

    # ---- scatter-add via the edges-only bf16 incidence (self-loop block == I is
    #      already folded into the init above) ----
    oh = oh_ref[...]                                                             # (N, TE) bf16
    out_ref[...] += jnp.dot(oh, msg.astype(bf16), preferred_element_type=f32)    # (N, HF)
    den_acc[...] += jnp.dot(oh, expv.astype(bf16), preferred_element_type=f32)   # (N, H)

    # ---- finalize: normalize by the segment sum, add bias ----
    @pl.when(eb == last)
    def _():
        den_hf = jnp.dot(den_acc[...], headt_ref[...], preferred_element_type=f32)
        out_ref[...] = out_ref[...] * pl.reciprocal(den_hf, approx=True) + bias_ref[...]


def dgat_pallas(params, x, edge_index, edge_feats, *, heads, num_out_feats,
                negative_slope=0.2, edge_tile=128):
    f32 = jnp.float32
    bf16 = jnp.bfloat16
    N, Fin = x.shape
    E = edge_index.shape[1]
    Fe = edge_feats.shape[1]
    H, Fout = heads, num_out_feats
    HF = H * Fout
    K = Fin * HF
    FinH = Fin * H
    hidden = params["src_w1"].shape[1]

    x = x.astype(f32)
    edge_feats = edge_feats.astype(f32)

    # Edge tile: it is the lane dim of the incidence block, so keep it a multiple of 128.
    TE = edge_tile
    nblk = pl.cdiv(E, TE)
    E_pad = nblk * TE
    pad = E_pad - E

    # flow='source_to_target' -> i = 1: the reference gathers BOTH x_i and x_j with
    # edge_index[1] (reproduced faithfully); messages scatter to edge_index[0].
    xg = jnp.pad(x[edge_index[1]], ((0, pad), (0, 0)))
    ef = jnp.pad(edge_feats, ((0, pad), (0, 0)))

    # attention parameter splits (head-major flatten of the HF axis)
    att = params["att"].astype(f32)                 # (1, H, 2*Fout)
    att_i = att[0, :, :Fout]                        # (H, Fout)
    att_j = att[0, :, Fout:]                        # (H, Fout)
    att_i_flat = att_i.reshape(HF)
    att_j_flat = att_j.reshape(HF)
    head_of = jnp.arange(HF) // Fout
    head_eq = (head_of[:, None] == jnp.arange(H)[None, :]).astype(f32)   # (HF, H)
    headt = head_eq.T                                                    # (H, HF)
    amap_j = att_j_flat[:, None] * head_eq                               # (HF, H)

    # Self path fold: raw_self = x @ (self_weights @ sscore), computed once in f32.
    sscore = (att_i_flat + att_j_flat)[:, None] * head_eq                # (HF, H)
    selfscore = params["self_weights"].astype(f32) @ sscore              # (Fin, H)
    raw_self = x @ selfscore
    raw_self = jnp.where(raw_self >= 0, raw_self, negative_slope * raw_self)
    # Per-edge softmax shift = destination node's (post-leaky) self logit.
    shift_e = jnp.pad(raw_self[edge_index[0]], ((0, pad), (0, 0)))       # (E_pad, H)

    # src WeightNet second layer folded with att_i -> only a (hidden, Fin*H) matrix.
    w2sa = jnp.einsum(
        "ufho,ho->ufh",
        params["src_w2"].astype(f32).reshape(hidden, Fin, H, Fout), att_i,
    ).reshape(hidden, FinH)
    b2sa = jnp.einsum(
        "fho,ho->fh",
        params["src_b2"].astype(f32).reshape(Fin, H, Fout), att_i,
    ).reshape(1, FinH)

    # 0/1 selector matrices (exact in bf16): per-edge bmm as lane-dense matmuls.
    expand = (jnp.arange(K)[None, :] // HF == jnp.arange(Fin)[:, None]).astype(bf16)     # (Fin, K)
    coll = ((jnp.arange(K) % HF)[:, None] == jnp.arange(HF)[None, :]).astype(bf16)       # (K, HF)
    expand_s = (jnp.arange(FinH)[None, :] // H == jnp.arange(Fin)[:, None]).astype(f32)  # (Fin, FinH)
    coll_s = ((jnp.arange(FinH) % H)[:, None] == jnp.arange(H)[None, :]).astype(f32)     # (FinH, H)

    # Edges-only one-hot incidence (the self-loop block of the reference incidence is
    # the identity and is folded into the kernel's init/denominator directly).
    dst = edge_index[0]
    oh = (dst[None, :] == jnp.arange(N, dtype=dst.dtype)[:, None]).astype(bf16)  # (N, E)
    oh = jnp.pad(oh, ((0, 0), (0, pad)))                                         # (N, E_pad)

    kernel = functools.partial(_dgat_kernel, negative_slope=negative_slope)

    def edge_spec(w):
        return pl.BlockSpec((TE, w), lambda eb: (eb, 0))

    def full_spec(a, b):
        return pl.BlockSpec((a, b), lambda eb: (0, 0))

    operands = (
        ef, xg, shift_e, oh,
        x,
        params["src_w1"].astype(bf16), params["src_b1"].astype(f32),
        w2sa, b2sa, expand_s, coll_s,
        params["dst_w1"].astype(bf16), params["dst_b1"].astype(f32),
        params["dst_w2"].astype(bf16), params["dst_b2"].astype(f32),
        expand, coll,
        amap_j, headt, params["self_weights"].astype(bf16),
        params["bias"].astype(f32),
    )
    in_specs = [
        edge_spec(Fe), edge_spec(Fin), edge_spec(H),
        pl.BlockSpec((N, TE), lambda eb: (0, eb)),
        full_spec(N, Fin),
        full_spec(Fe, hidden), full_spec(1, hidden),
        full_spec(hidden, FinH), full_spec(1, FinH), full_spec(Fin, FinH), full_spec(FinH, H),
        full_spec(Fe, hidden), full_spec(1, hidden),
        full_spec(hidden, K), full_spec(1, K),
        full_spec(Fin, K), full_spec(K, HF),
        full_spec(HF, H), full_spec(H, HF), full_spec(Fin, HF),
        full_spec(1, HF),
    ]

    return pl.pallas_call(
        kernel,
        out_shape=jax.ShapeDtypeStruct((N, HF), f32),
        grid_spec=pltpu.PrefetchScalarGridSpec(
            num_scalar_prefetch=0,
            grid=(nblk,),
            in_specs=in_specs,
            out_specs=pl.BlockSpec((N, HF), lambda eb: (0, 0)),
            scratch_shapes=[pltpu.VMEM((N, H), f32)],
        ),
        compiler_params=pltpu.CompilerParams(
            # single grid axis is a reduction into the resident output accumulator
            dimension_semantics=("arbitrary",),
            vmem_limit_bytes=32 * 1024 * 1024,
        ),
    )(*operands)


def dgat_reference(params, x, edge_index, edge_feats, *, heads, num_out_feats,
                   negative_slope=0.2):
    """Pure-JAX reference mirroring the PyTorch forward."""
    N, Fin = x.shape
    E = edge_index.shape[1]
    H, Fout = heads, num_out_feats
    HF = H * Fout
    hi = jax.lax.Precision.HIGHEST

    x_gath = x[edge_index[1]]

    def wnet(w1, b1, w2, b2):
        h = jnp.maximum(jnp.dot(edge_feats, w1, precision=hi) + b1, 0.0)
        return (jnp.dot(h, w2, precision=hi) + b2).reshape(E, Fin, HF)

    src_w = wnet(params["src_w1"], params["src_b1"], params["src_w2"], params["src_b2"])
    dst_w = wnet(params["dst_w1"], params["dst_b1"], params["dst_w2"], params["dst_b2"])
    x_i = jnp.einsum("ei,eio->eo", x_gath, src_w, precision=hi).reshape(E, H, Fout)
    x_j = jnp.einsum("ei,eio->eo", x_gath, dst_w, precision=hi).reshape(E, H, Fout)
    x_self = jnp.dot(x, params["self_weights"], precision=hi).reshape(N, H, Fout)

    att = params["att"]
    att_i, att_j = att[0, :, :Fout], att[0, :, Fout:]
    raw_edge = (x_i * att_i).sum(-1) + (x_j * att_j).sum(-1)
    raw_self = (x_self * att_i).sum(-1) + (x_self * att_j).sum(-1)
    raw = jnp.concatenate([raw_edge, raw_self], axis=0)
    raw = jnp.where(raw >= 0, raw, negative_slope * raw)

    alpha_idxs = jnp.concatenate(
        [edge_index[0], jnp.arange(N, dtype=edge_index.dtype)], axis=0)
    seg_max = jax.ops.segment_max(raw, alpha_idxs, num_segments=N)
    expv = jnp.exp(raw - seg_max[alpha_idxs])
    seg_sum = jax.ops.segment_sum(expv, alpha_idxs, num_segments=N)
    alpha = expv / (seg_sum[alpha_idxs] + 1e-16)

    messages = jnp.concatenate([x_j, x_self], axis=0) * alpha[:, :, None]
    aggr = jax.ops.segment_sum(messages.reshape(E + N, HF), alpha_idxs, num_segments=N)
    return aggr + params["bias"]


def init_params(key, Fin, Fout, Fe, hidden, H):
    HF = H * Fout

    def glorot(k, shape):
        std = math.sqrt(6.0 / (shape[-2] + shape[-1]))
        return jax.random.uniform(k, shape, jnp.float32, -std, std)

    ks = jax.random.split(key, 10)
    return {
        "src_w1": glorot(ks[0], (Fe, hidden)),
        "src_b1": 0.1 * jax.random.normal(ks[1], (1, hidden), jnp.float32),
        "src_w2": glorot(ks[2], (hidden, Fin * HF)),
        "src_b2": 0.1 * jax.random.normal(ks[3], (1, Fin * HF), jnp.float32),
        "dst_w1": glorot(ks[4], (Fe, hidden)),
        "dst_b1": 0.1 * jax.random.normal(ks[5], (1, hidden), jnp.float32),
        "dst_w2": glorot(ks[6], (hidden, Fin * HF)),
        "dst_b2": 0.1 * jax.random.normal(ks[7], (1, Fin * HF), jnp.float32),
        "self_weights": glorot(ks[8], (Fin, HF)),          # glorot(self_weights)
        "att": glorot(ks[9], (1, H, 2 * Fout)),
        "bias": jnp.zeros((1, HF), jnp.float32),           # zeros(bias), concat=True
    }


if __name__ == "__main__":
    # small toy graph; E=300 with edge_tile=128 exercises a 3-step accumulator grid
    N, Fin, Fout, H, Fe, hidden, E = 16, 4, 8, 2, 6, 16, 300

    key = jax.random.PRNGKey(0)
    kx, ke, kf, kp = jax.random.split(key, 4)
    x = jax.random.normal(kx, (N, Fin), jnp.float32)
    edge_index = jax.random.randint(ke, (2, E), 0, N, jnp.int32)
    edge_feats = jax.random.normal(kf, (E, Fe), jnp.float32)
    params = init_params(kp, Fin, Fout, Fe, hidden, H)

    out = dgat_pallas(params, x, edge_index, edge_feats, heads=H, num_out_feats=Fout)
    out = jax.block_until_ready(out)

    ref = dgat_reference(params, x, edge_index, edge_feats, heads=H, num_out_feats=Fout)
    ref = jax.block_until_ready(ref)

    # Tolerance budgets for the bf16-fed MXU matmuls (hyper-net, selectors, incidence
    # scatter) with f32 accumulation and the approximate EUP reciprocal.
    if not np.allclose(np.asarray(out), np.asarray(ref), atol=2e-2, rtol=2e-2):
        err = float(np.max(np.abs(np.asarray(out) - np.asarray(ref))))
        raise AssertionError(f"Pallas DGAT output mismatch vs JAX reference (max abs err {err})")
    print("KERNEL_OK")
</pallas_src>

<mosaic_0001>
module attributes {stable_mosaic.version = 11 : i64} {
  func.func @_dgat_kernel(%arg0: i32, %arg1: memref<128x6xf32, #tpu.memory_space<vmem>>, %arg2: memref<128x4xf32, #tpu.memory_space<vmem>>, %arg3: memref<128x2xf32, #tpu.memory_space<vmem>>, %arg4: memref<16x128xbf16, #tpu.memory_space<vmem>>, %arg5: memref<16x4xf32, #tpu.memory_space<vmem>>, %arg6: memref<6x16xbf16, #tpu.memory_space<vmem>>, %arg7: memref<1x16xf32, #tpu.memory_space<vmem>>, %arg8: memref<16x8xf32, #tpu.memory_space<vmem>>, %arg9: memref<1x8xf32, #tpu.memory_space<vmem>>, %arg10: memref<4x8xf32, #tpu.memory_space<vmem>>, %arg11: memref<8x2xf32, #tpu.memory_space<vmem>>, %arg12: memref<6x16xbf16, #tpu.memory_space<vmem>>, %arg13: memref<1x16xf32, #tpu.memory_space<vmem>>, %arg14: memref<16x64xbf16, #tpu.memory_space<vmem>>, %arg15: memref<1x64xf32, #tpu.memory_space<vmem>>, %arg16: memref<4x64xbf16, #tpu.memory_space<vmem>>, %arg17: memref<64x16xbf16, #tpu.memory_space<vmem>>, %arg18: memref<16x2xf32, #tpu.memory_space<vmem>>, %arg19: memref<2x16xf32, #tpu.memory_space<vmem>>, %arg20: memref<4x16xbf16, #tpu.memory_space<vmem>>, %arg21: memref<1x16xf32, #tpu.memory_space<vmem>>, %arg22: memref<16x16xf32, #tpu.memory_space<vmem>>, %arg23: memref<16x2xf32, #tpu.memory_space<vmem>>) attributes {dimension_semantics = [#tpu.dimension_semantics<arbitrary>], iteration_bounds = array<i64: 3>, scalar_prefetch = 0 : i64, scratch_operands = 1 : i64, tpu.core_type = #tpu.core_type<tc>, window_params = [{transform_indices = @transform_0, window_bounds = array<i64: 128, 6>}, {transform_indices = @transform_1, window_bounds = array<i64: 128, 4>}, {transform_indices = @transform_2, window_bounds = array<i64: 128, 2>}, {transform_indices = @transform_3, window_bounds = array<i64: 16, 128>}, {pipeline_mode = #tpu.pipeline_mode<synchronous>, transform_indices = @transform_4, window_bounds = array<i64: 16, 4>}, {pipeline_mode = #tpu.pipeline_mode<synchronous>, transform_indices = @transform_5, window_bounds = array<i64: 6, 16>}, {pipeline_mode = #tpu.pipeline_mode<synchronous>, transform_indices = @transform_6, window_bounds = array<i64: 1, 16>}, {pipeline_mode = #tpu.pipeline_mode<synchronous>, transform_indices = @transform_7, window_bounds = array<i64: 16, 8>}, {pipeline_mode = #tpu.pipeline_mode<synchronous>, transform_indices = @transform_8, window_bounds = array<i64: 1, 8>}, {pipeline_mode = #tpu.pipeline_mode<synchronous>, transform_indices = @transform_9, window_bounds = array<i64: 4, 8>}, {pipeline_mode = #tpu.pipeline_mode<synchronous>, transform_indices = @transform_10, window_bounds = array<i64: 8, 2>}, {pipeline_mode = #tpu.pipeline_mode<synchronous>, transform_indices = @transform_11, window_bounds = array<i64: 6, 16>}, {pipeline_mode = #tpu.pipeline_mode<synchronous>, transform_indices = @transform_12, window_bounds = array<i64: 1, 16>}, {pipeline_mode = #tpu.pipeline_mode<synchronous>, transform_indices = @transform_13, window_bounds = array<i64: 16, 64>}, {pipeline_mode = #tpu.pipeline_mode<synchronous>, transform_indices = @transform_14, window_bounds = array<i64: 1, 64>}, {pipeline_mode = #tpu.pipeline_mode<synchronous>, transform_indices = @transform_15, window_bounds = array<i64: 4, 64>}, {pipeline_mode = #tpu.pipeline_mode<synchronous>, transform_indices = @transform_16, window_bounds = array<i64: 64, 16>}, {pipeline_mode = #tpu.pipeline_mode<synchronous>, transform_indices = @transform_17, window_bounds = array<i64: 16, 2>}, {pipeline_mode = #tpu.pipeline_mode<synchronous>, transform_indices = @transform_18, window_bounds = array<i64: 2, 16>}, {pipeline_mode = #tpu.pipeline_mode<synchronous>, transform_indices = @transform_19, window_bounds = array<i64: 4, 16>}, {pipeline_mode = #tpu.pipeline_mode<synchronous>, transform_indices = @transform_20, window_bounds = array<i64: 1, 16>}, {pipeline_mode = #tpu.pipeline_mode<synchronous>, transform_indices = @transform_21, window_bounds = array<i64: 16, 16>}]} {
    %c0_i32 = arith.constant 0 : i32
    %0 = arith.cmpi eq, %arg0, %c0_i32 : i32
    %1 = arith.extui %0 : i1 to i32
    %c0_i32_0 = arith.constant 0 : i32
    %2 = arith.cmpi ne, %1, %c0_i32_0 : i32
    scf.if %2 {
      %c0_60 = arith.constant 0 : index
      %c0_61 = arith.constant 0 : index
      %71 = vector.load %arg5[%c0_60, %c0_61] : memref<16x4xf32, #tpu.memory_space<vmem>>, vector<16x4xf32>
      %72 = arith.truncf %71 : vector<16x4xf32> to vector<16x4xbf16>
      %c0_62 = arith.constant 0 : index
      %c0_63 = arith.constant 0 : index
      %73 = vector.load %arg20[%c0_62, %c0_63] : memref<4x16xbf16, #tpu.memory_space<vmem>>, vector<4x16xbf16>
      %cst_64 = arith.constant dense<0.000000e+00> : vector<16x16xf32>
      %74 = tpu.matmul %72, %73, %cst_64 {dimension_numbers = #tpu.dot_dimension_numbers<[1], [0], [0], [1], [0, 0, 1, 1], [], []>} : vector<16x4xbf16>, vector<4x16xbf16>, vector<16x16xf32> -> vector<16x16xf32>
      %c0_65 = arith.constant 0 : index
      %c0_66 = arith.constant 0 : index
      %75 = vector.load %arg22[%c0_65, %c0_66] : memref<16x16xf32, #tpu.memory_space<vmem>>, vector<16x16xf32>
      tpu.vector_store %arg22[%c0_65, %c0_66], %74 {strides = array<i32>} : memref<16x16xf32, #tpu.memory_space<vmem>>, vector<16x16xf32>,
      %cst_67 = arith.constant 1.000000e+00 : f32
      %76 = vector.broadcast %cst_67 : f32 to vector<16x2xf32>
      %c0_68 = arith.constant 0 : index
      %c0_69 = arith.constant 0 : index
      %77 = vector.load %arg23[%c0_68, %c0_69] : memref<16x2xf32, #tpu.memory_space<vmem>>, vector<16x2xf32>
      tpu.vector_store %arg23[%c0_68, %c0_69], %76 {strides = array<i32>} : memref<16x2xf32, #tpu.memory_space<vmem>>, vector<16x2xf32>,
    } else {
    }
    %c0 = arith.constant 0 : index
    %c0_1 = arith.constant 0 : index
    %3 = vector.load %arg1[%c0, %c0_1] : memref<128x6xf32, #tpu.memory_space<vmem>>, vector<128x6xf32>
    %c0_2 = arith.constant 0 : index
    %c0_3 = arith.constant 0 : index
    %4 = vector.load %arg2[%c0_2, %c0_3] : memref<128x4xf32, #tpu.memory_space<vmem>>, vector<128x4xf32>
    %5 = arith.truncf %3 : vector<128x6xf32> to vector<128x6xbf16>
    %6 = arith.truncf %4 : vector<128x4xf32> to vector<128x4xbf16>
    %c0_4 = arith.constant 0 : index
    %c0_5 = arith.constant 0 : index
    %7 = vector.load %arg12[%c0_4, %c0_5] : memref<6x16xbf16, #tpu.memory_space<vmem>>, vector<6x16xbf16>
    %cst = arith.constant dense<0.000000e+00> : vector<128x16xf32>
    %8 = tpu.matmul %5, %7, %cst {dimension_numbers = #tpu.dot_dimension_numbers<[1], [0], [0], [1], [0, 0, 1, 1], [], []>} : vector<128x6xbf16>, vector<6x16xbf16>, vector<128x16xf32> -> vector<128x16xf32>
    %c0_6 = arith.constant 0 : index
    %c0_7 = arith.constant 0 : index
    %9 = vector.load %arg13[%c0_6, %c0_7] : memref<1x16xf32, #tpu.memory_space<vmem>>, vector<1x16xf32>
    %10 = vector.broadcast %9 : vector<1x16xf32> to vector<128x16xf32>
    %11 = arith.addf %8, %10 : vector<128x16xf32>
    %cst_8 = arith.constant 0.000000e+00 : f32
    %12 = vector.broadcast %cst_8 : f32 to vector<128x16xf32>
    %13 = arith.maximumf %11, %12 : vector<128x16xf32>
    %14 = arith.truncf %13 : vector<128x16xf32> to vector<128x16xbf16>
    %c0_9 = arith.constant 0 : index
    %c0_10 = arith.constant 0 : index
    %15 = vector.load %arg14[%c0_9, %c0_10] : memref<16x64xbf16, #tpu.memory_space<vmem>>, vector<16x64xbf16>
    %cst_11 = arith.constant dense<0.000000e+00> : vector<128x64xf32>
    %16 = tpu.matmul %14, %15, %cst_11 {dimension_numbers = #tpu.dot_dimension_numbers<[1], [0], [0], [1], [0, 0, 1, 1], [], []>} : vector<128x16xbf16>, vector<16x64xbf16>, vector<128x64xf32> -> vector<128x64xf32>
    %c0_12 = arith.constant 0 : index
    %c0_13 = arith.constant 0 : index
    %17 = vector.load %arg15[%c0_12, %c0_13] : memref<1x64xf32, #tpu.memory_space<vmem>>, vector<1x64xf32>
    %18 = vector.broadcast %17 : vector<1x64xf32> to vector<128x64xf32>
    %19 = arith.addf %16, %18 : vector<128x64xf32>
    %c0_14 = arith.constant 0 : index
    %c0_15 = arith.constant 0 : index
    %20 = vector.load %arg16[%c0_14, %c0_15] : memref<4x64xbf16, #tpu.memory_space<vmem>>, vector<4x64xbf16>
    %cst_16 = arith.constant dense<0.000000e+00> : vector<128x64xf32>
    %21 = tpu.matmul %6, %20, %cst_16 {dimension_numbers = #tpu.dot_dimension_numbers<[1], [0], [0], [1], [0, 0, 1, 1], [], []>} : vector<128x4xbf16>, vector<4x64xbf16>, vector<128x64xf32> -> vector<128x64xf32>
    %22 = arith.mulf %19, %21 : vector<128x64xf32>
    %23 = arith.truncf %22 : vector<128x64xf32> to vector<128x64xbf16>
    %c0_17 = arith.constant 0 : index
    %c0_18 = arith.constant 0 : index
    %24 = vector.load %arg17[%c0_17, %c0_18] : memref<64x16xbf16, #tpu.memory_space<vmem>>, vector<64x16xbf16>
    %cst_19 = arith.constant dense<0.000000e+00> : vector<128x16xf32>
    %25 = tpu.matmul %23, %24, %cst_19 {dimension_numbers = #tpu.dot_dimension_numbers<[1], [0], [0], [1], [0, 0, 1, 1], [], []>} : vector<128x64xbf16>, vector<64x16xbf16>, vector<128x16xf32> -> vector<128x16xf32>
    %c0_20 = arith.constant 0 : index
    %c0_21 = arith.constant 0 : index
    %26 = vector.load %arg6[%c0_20, %c0_21] : memref<6x16xbf16, #tpu.memory_space<vmem>>, vector<6x16xbf16>
    %cst_22 = arith.constant dense<0.000000e+00> : vector<128x16xf32>
    %27 = tpu.matmul %5, %26, %cst_22 {dimension_numbers = #tpu.dot_dimension_numbers<[1], [0], [0], [1], [0, 0, 1, 1], [], []>} : vector<128x6xbf16>, vector<6x16xbf16>, vector<128x16xf32> -> vector<128x16xf32>
    %c0_23 = arith.constant 0 : index
    %c0_24 = arith.constant 0 : index
    %28 = vector.load %arg7[%c0_23, %c0_24] : memref<1x16xf32, #tpu.memory_space<vmem>>, vector<1x16xf32>
    %29 = vector.broadcast %28 : vector<1x16xf32> to vector<128x16xf32>
    %30 = arith.addf %27, %29 : vector<128x16xf32>
    %cst_25 = arith.constant 0.000000e+00 : f32
    %31 = vector.broadcast %cst_25 : f32 to vector<128x16xf32>
    %32 = arith.maximumf %30, %31 : vector<128x16xf32>
    %c0_26 = arith.constant 0 : index
    %c0_27 = arith.constant 0 : index
    %33 = vector.load %arg8[%c0_26, %c0_27] : memref<16x8xf32, #tpu.memory_space<vmem>>, vector<16x8xf32>
    %cst_28 = arith.constant dense<0.000000e+00> : vector<128x8xf32>
    %34 = tpu.matmul %32, %33, %cst_28 {dimension_numbers = #tpu.dot_dimension_numbers<[1], [0], [0], [1], [0, 0, 1, 1], [], []>} : vector<128x16xf32>, vector<16x8xf32>, vector<128x8xf32> -> vector<128x8xf32>
    %c0_29 = arith.constant 0 : index
    %c0_30 = arith.constant 0 : index
    %35 = vector.load %arg9[%c0_29, %c0_30] : memref<1x8xf32, #tpu.memory_space<vmem>>, vector<1x8xf32>
    %36 = vector.broadcast %35 : vector<1x8xf32> to vector<128x8xf32>
    %37 = arith.addf %34, %36 : vector<128x8xf32>
    %c0_31 = arith.constant 0 : index
    %c0_32 = arith.constant 0 : index
    %38 = vector.load %arg10[%c0_31, %c0_32] : memref<4x8xf32, #tpu.memory_space<vmem>>, vector<4x8xf32>
    %cst_33 = arith.constant dense<0.000000e+00> : vector<128x8xf32>
    %39 = tpu.matmul %4, %38, %cst_33 {dimension_numbers = #tpu.dot_dimension_numbers<[1], [0], [0], [1], [0, 0, 1, 1], [], []>} : vector<128x4xf32>, vector<4x8xf32>, vector<128x8xf32> -> vector<128x8xf32>
    %40 = arith.mulf %37, %39 : vector<128x8xf32>
    %c0_34 = arith.constant 0 : index
    %c0_35 = arith.constant 0 : index
    %41 = vector.load %arg11[%c0_34, %c0_35] : memref<8x2xf32, #tpu.memory_space<vmem>>, vector<8x2xf32>
    %cst_36 = arith.constant dense<0.000000e+00> : vector<128x2xf32>
    %42 = tpu.matmul %40, %41, %cst_36 {dimension_numbers = #tpu.dot_dimension_numbers<[1], [0], [0], [1], [0, 0, 1, 1], [], []>} : vector<128x8xf32>, vector<8x2xf32>, vector<128x2xf32> -> vector<128x2xf32>
    %c0_37 = arith.constant 0 : index
    %c0_38 = arith.constant 0 : index
    %43 = vector.load %arg18[%c0_37, %c0_38] : memref<16x2xf32, #tpu.memory_space<vmem>>, vector<16x2xf32>
    %cst_39 = arith.constant dense<0.000000e+00> : vector<128x2xf32>
    %44 = tpu.matmul %25, %43, %cst_39 {dimension_numbers = #tpu.dot_dimension_numbers<[1], [0], [0], [1], [0, 0, 1, 1], [], []>} : vector<128x16xf32>, vector<16x2xf32>, vector<128x2xf32> -> vector<128x2xf32>
    %45 = arith.addf %42, %44 : vector<128x2xf32>
    %cst_40 = arith.constant 0.000000e+00 : f32
    %46 = vector.broadcast %cst_40 : f32 to vector<128x2xf32>
    %47 = arith.cmpf oge, %45, %46 : vector<128x2xf32>
    %cst_41 = arith.constant 2.000000e-01 : f32
    %48 = vector.broadcast %cst_41 : f32 to vector<128x2xf32>
    %49 = arith.mulf %48, %45 : vector<128x2xf32>
    %50 = arith.select %47, %45, %49 : vector<128x2xi1>, vector<128x2xf32>
    %c0_42 = arith.constant 0 : index
    %c0_43 = arith.constant 0 : index
    %51 = vector.load %arg3[%c0_42, %c0_43] : memref<128x2xf32, #tpu.memory_space<vmem>>, vector<128x2xf32>
    %52 = arith.subf %50, %51 : vector<128x2xf32>
    %53 = math.exp %52 : vector<128x2xf32>
    %c0_44 = arith.constant 0 : index
    %c0_45 = arith.constant 0 : index
    %54 = vector.load %arg19[%c0_44, %c0_45] : memref<2x16xf32, #tpu.memory_space<vmem>>, vector<2x16xf32>
    %cst_46 = arith.constant dense<0.000000e+00> : vector<128x16xf32>
    %55 = tpu.matmul %53, %54, %cst_46 {dimension_numbers = #tpu.dot_dimension_numbers<[1], [0], [0], [1], [0, 0, 1, 1], [], []>} : vector<128x2xf32>, vector<2x16xf32>, vector<128x16xf32> -> vector<128x16xf32>
    %56 = arith.mulf %25, %55 : vector<128x16xf32>
    %c0_47 = arith.constant 0 : index
    %c0_48 = arith.constant 0 : index
    %57 = vector.load %arg4[%c0_47, %c0_48] : memref<16x128xbf16, #tpu.memory_space<vmem>>, vector<16x128xbf16>
    %c0_49 = arith.constant 0 : index
    %c0_50 = arith.constant 0 : index
    %58 = vector.load %arg22[%c0_49, %c0_50] : memref<16x16xf32, #tpu.memory_space<vmem>>, vector<16x16xf32>
    %59 = arith.truncf %56 : vector<128x16xf32> to vector<128x16xbf16>
    %cst_51 = arith.constant dense<0.000000e+00> : vector<16x16xf32>
    %60 = tpu.matmul %57, %59, %cst_51 {dimension_numbers = #tpu.dot_dimension_numbers<[1], [0], [0], [1], [0, 0, 1, 1], [], []>} : vector<16x128xbf16>, vector<128x16xbf16>, vector<16x16xf32> -> vector<16x16xf32>
    %61 = arith.addf %58, %60 : vector<16x16xf32>
    %c0_52 = arith.constant 0 : index
    %c0_53 = arith.constant 0 : index
    %62 = vector.load %arg22[%c0_52, %c0_53] : memref<16x16xf32, #tpu.memory_space<vmem>>, vector<16x16xf32>
    tpu.vector_store %arg22[%c0_52, %c0_53], %61 {strides = array<i32>} : memref<16x16xf32, #tpu.memory_space<vmem>>, vector<16x16xf32>,
    %c0_54 = arith.constant 0 : index
    %c0_55 = arith.constant 0 : index
    %63 = vector.load %arg23[%c0_54, %c0_55] : memref<16x2xf32, #tpu.memory_space<vmem>>, vector<16x2xf32>
    %64 = arith.truncf %53 : vector<128x2xf32> to vector<128x2xbf16>
    %cst_56 = arith.constant dense<0.000000e+00> : vector<16x2xf32>
    %65 = tpu.matmul %57, %64, %cst_56 {dimension_numbers = #tpu.dot_dimension_numbers<[1], [0], [0], [1], [0, 0, 1, 1], [], []>} : vector<16x128xbf16>, vector<128x2xbf16>, vector<16x2xf32> -> vector<16x2xf32>
    %66 = arith.addf %63, %65 : vector<16x2xf32>
    %c0_57 = arith.constant 0 : index
    %c0_58 = arith.constant 0 : index
    %67 = vector.load %arg23[%c0_57, %c0_58] : memref<16x2xf32, #tpu.memory_space<vmem>>, vector<16x2xf32>
    tpu.vector_store %arg23[%c0_57, %c0_58], %66 {strides = array<i32>} : memref<16x2xf32, #tpu.memory_space<vmem>>, vector<16x2xf32>,
    %c2_i32 = arith.constant 2 : i32
    %68 = arith.cmpi eq, %arg0, %c2_i32 : i32
    %69 = arith.extui %68 : i1 to i32
    %c0_i32_59 = arith.constant 0 : i32
    %70 = arith.cmpi ne, %69, %c0_i32_59 : i32
    scf.if %70 {
      %c0_60 = arith.constant 0 : index
      %c0_61 = arith.constant 0 : index
      %71 = vector.load %arg23[%c0_60, %c0_61] : memref<16x2xf32, #tpu.memory_space<vmem>>, vector<16x2xf32>
      %c0_62 = arith.constant 0 : index
      %c0_63 = arith.constant 0 : index
      %72 = vector.load %arg19[%c0_62, %c0_63] : memref<2x16xf32, #tpu.memory_space<vmem>>, vector<2x16xf32>
      %cst_64 = arith.constant dense<0.000000e+00> : vector<16x16xf32>
      %73 = tpu.matmul %71, %72, %cst_64 {dimension_numbers = #tpu.dot_dimension_numbers<[1], [0], [0], [1], [0, 0, 1, 1], [], []>} : vector<16x2xf32>, vector<2x16xf32>, vector<16x16xf32> -> vector<16x16xf32>
      %c0_65 = arith.constant 0 : index
      %c0_66 = arith.constant 0 : index
      %74 = vector.load %arg22[%c0_65, %c0_66] : memref<16x16xf32, #tpu.memory_space<vmem>>, vector<16x16xf32>
      %75 = tpu.reciprocal %73 {approx = true} : vector<16x16xf32> -> vector<16x16xf32>
      %76 = arith.mulf %74, %75 : vector<16x16xf32>
      %c0_67 = arith.constant 0 : index
      %c0_68 = arith.constant 0 : index
      %77 = vector.load %arg21[%c0_67, %c0_68] : memref<1x16xf32, #tpu.memory_space<vmem>>, vector<1x16xf32>
      %78 = vector.broadcast %77 : vector<1x16xf32> to vector<16x16xf32>
      %79 = arith.addf %76, %78 : vector<16x16xf32>
      %c0_69 = arith.constant 0 : index
      %c0_70 = arith.constant 0 : index
      %80 = vector.load %arg22[%c0_69, %c0_70] : memref<16x16xf32, #tpu.memory_space<vmem>>, vector<16x16xf32>
      tpu.vector_store %arg22[%c0_69, %c0_70], %79 {strides = array<i32>} : memref<16x16xf32, #tpu.memory_space<vmem>>, vector<16x16xf32>,
    } else {
    }
    return
  }
  func.func @transform_0(%arg0: i32) -> (i32, i32) {
    %c0_i32 = arith.constant 0 : i32
    %c0_i32_0 = arith.constant 0 : i32
    return %arg0, %c0_i32 : i32, i32
  }
  func.func @transform_1(%arg0: i32) -> (i32, i32) {
    %c0_i32 = arith.constant 0 : i32
    %c0_i32_0 = arith.constant 0 : i32
    return %arg0, %c0_i32 : i32, i32
  }
  func.func @transform_2(%arg0: i32) -> (i32, i32) {
    %c0_i32 = arith.constant 0 : i32
    %c0_i32_0 = arith.constant 0 : i32
    return %arg0, %c0_i32 : i32, i32
  }
  func.func @transform_3(%arg0: i32) -> (i32, i32) {
    %c0_i32 = arith.constant 0 : i32
    %c0_i32_0 = arith.constant 0 : i32
    return %c0_i32, %arg0 : i32, i32
  }
  func.func @transform_4(%arg0: i32) -> (i32, i32) {
    %c0_i32 = arith.constant 0 : i32
    %c0_i32_0 = arith.constant 0 : i32
    %c0_i32_1 = arith.constant 0 : i32
    return %c0_i32, %c0_i32_0 : i32, i32
  }
  func.func @transform_5(%arg0: i32) -> (i32, i32) {
    %c0_i32 = arith.constant 0 : i32
    %c0_i32_0 = arith.constant 0 : i32
    %c0_i32_1 = arith.constant 0 : i32
    return %c0_i32, %c0_i32_0 : i32, i32
  }
  func.func @transform_6(%arg0: i32) -> (i32, i32) {
    %c0_i32 = arith.constant 0 : i32
    %c0_i32_0 = arith.constant 0 : i32
    %c0_i32_1 = arith.constant 0 : i32
    return %c0_i32, %c0_i32_0 : i32, i32
  }
  func.func @transform_7(%arg0: i32) -> (i32, i32) {
    %c0_i32 = arith.constant 0 : i32
    %c0_i32_0 = arith.constant 0 : i32
    %c0_i32_1 = arith.constant 0 : i32
    return %c0_i32, %c0_i32_0 : i32, i32
  }
  func.func @transform_8(%arg0: i32) -> (i32, i32) {
    %c0_i32 = arith.constant 0 : i32
    %c0_i32_0 = arith.constant 0 : i32
    %c0_i32_1 = arith.constant 0 : i32
    return %c0_i32, %c0_i32_0 : i32, i32
  }
  func.func @transform_9(%arg0: i32) -> (i32, i32) {
    %c0_i32 = arith.constant 0 : i32
    %c0_i32_0 = arith.constant 0 : i32
    %c0_i32_1 = arith.constant 0 : i32
    return %c0_i32, %c0_i32_0 : i32, i32
  }
  func.func @transform_10(%arg0: i32) -> (i32, i32) {
    %c0_i32 = arith.constant 0 : i32
    %c0_i32_0 = arith.constant 0 : i32
    %c0_i32_1 = arith.constant 0 : i32
    return %c0_i32, %c0_i32_0 : i32, i32
  }
  func.func @transform_11(%arg0: i32) -> (i32, i32) {
    %c0_i32 = arith.constant 0 : i32
    %c0_i32_0 = arith.constant 0 : i32
    %c0_i32_1 = arith.constant 0 : i32
    return %c0_i32, %c0_i32_0 : i32, i32
  }
  func.func @transform_12(%arg0: i32) -> (i32, i32) {
    %c0_i32 = arith.constant 0 : i32
    %c0_i32_0 = arith.constant 0 : i32
    %c0_i32_1 = arith.constant 0 : i32
    return %c0_i32, %c0_i32_0 : i32, i32
  }
  func.func @transform_13(%arg0: i32) -> (i32, i32) {
    %c0_i32 = arith.constant 0 : i32
    %c0_i32_0 = arith.constant 0 : i32
    %c0_i32_1 = arith.constant 0 : i32
    return %c0_i32, %c0_i32_0 : i32, i32
  }
  func.func @transform_14(%arg0: i32) -> (i32, i32) {
    %c0_i32 = arith.constant 0 : i32
    %c0_i32_0 = arith.constant 0 : i32
    %c0_i32_1 = arith.constant 0 : i32
    return %c0_i32, %c0_i32_0 : i32, i32
  }
  func.func @transform_15(%arg0: i32) -> (i32, i32) {
    %c0_i32 = arith.constant 0 : i32
    %c0_i32_0 = arith.constant 0 : i32
    %c0_i32_1 = arith.constant 0 : i32
    return %c0_i32, %c0_i32_0 : i32, i32
  }
  func.func @transform_16(%arg0: i32) -> (i32, i32) {
    %c0_i32 = arith.constant 0 : i32
    %c0_i32_0 = arith.constant 0 : i32
    %c0_i32_1 = arith.constant 0 : i32
    return %c0_i32, %c0_i32_0 : i32, i32
  }
  func.func @transform_17(%arg0: i32) -> (i32, i32) {
    %c0_i32 = arith.constant 0 : i32
    %c0_i32_0 = arith.constant 0 : i32
    %c0_i32_1 = arith.constant 0 : i32
    return %c0_i32, %c0_i32_0 : i32, i32
  }
  func.func @transform_18(%arg0: i32) -> (i32, i32) {
    %c0_i32 = arith.constant 0 : i32
    %c0_i32_0 = arith.constant 0 : i32
    %c0_i32_1 = arith.constant 0 : i32
    return %c0_i32, %c0_i32_0 : i32, i32
  }
  func.func @transform_19(%arg0: i32) -> (i32, i32) {
    %c0_i32 = arith.constant 0 : i32
    %c0_i32_0 = arith.constant 0 : i32
    %c0_i32_1 = arith.constant 0 : i32
    return %c0_i32, %c0_i32_0 : i32, i32
  }
  func.func @transform_20(%arg0: i32) -> (i32, i32) {
    %c0_i32 = arith.constant 0 : i32
    %c0_i32_0 = arith.constant 0 : i32
    %c0_i32_1 = arith.constant 0 : i32
    return %c0_i32, %c0_i32_0 : i32, i32
  }
  func.func @transform_21(%arg0: i32) -> (i32, i32) {
    %c0_i32 = arith.constant 0 : i32
    %c0_i32_0 = arith.constant 0 : i32
    %c0_i32_1 = arith.constant 0 : i32
    return %c0_i32, %c0_i32_0 : i32, i32
  }
}

</mosaic_0001>

<bundles_post_ra>
// kernel: tpu_custom_call.1
= control target key start
LH: loop header
LB: loop body
LE: loop exit
PB: predicated region body
PF: predicated region fallthrough
CT: control target
= control target key end

     0   :  { %s4591_s0 = inlined_call_operand.vmem [shape: f32[384,6], index: 0, kind: input, shape index: {}]   ;;  %s4592_s1 = inlined_call_operand.vmem [shape: f32[384,4], index: 1, kind: input, shape index: {}]   ;;  %s4593_s2 = inlined_call_operand.vmem [shape: f32[384,2], index: 2, kind: input, shape index: {}]   ;;  %s4594_s3 = inlined_call_operand.vmem [shape: bf16[16,384], index: 3, kind: input, shape index: {}]   ;;  %s4595_s4 = inlined_call_operand.vmem [shape: f32[16,4], index: 4, kind: input, shape index: {}]   ;;  %s4596_s5 = inlined_call_operand.vmem [shape: bf16[6,16], index: 5, kind: input, shape index: {}]   ;;  %s4597_s6 = inlined_call_operand.vmem [shape: f32[1,16], index: 6, kind: input, shape index: {}]   ;;  %s4598_s7 = inlined_call_operand.vmem [shape: f32[16,8], index: 7, kind: input, shape index: {}]   ;;  %s4599_s8 = inlined_call_operand.vmem [shape: f32[1,8], index: 8, kind: input, shape index: {}]   ;;  %s4600_s9 = inlined_call_operand.vmem [shape: f32[4,8], index: 9, kind: input, shape index: {}]   ;;  %s4601_s10 = inlined_call_operand.vmem [shape: f32[8,2], index: 10, kind: input, shape index: {}]   ;;  %s4602_s11 = inlined_call_operand.vmem [shape: bf16[6,16], index: 11, kind: input, shape index: {}]   ;;  %s4603_s12 = inlined_call_operand.vmem [shape: f32[1,16], index: 12, kind: input, shape index: {}]   ;;  %s4604_s13 = inlined_call_operand.vmem [shape: bf16[16,64], index: 13, kind: input, shape index: {}]   ;;  %s4605_s14 = inlined_call_operand.vmem [shape: f32[1,64], index: 14, kind: input, shape index: {}]   ;;  %s4606_s15 = inlined_call_operand.vmem [shape: bf16[4,64], index: 15, kind: input, shape index: {}]   ;;  %s4607_s16 = inlined_call_operand.vmem [shape: bf16[64,16], index: 16, kind: input, shape index: {}]   ;;  %s4608_s17 = inlined_call_operand.vmem [shape: f32[16,2], index: 17, kind: input, shape index: {}]   ;;  %s4609_s18 = inlined_call_operand.vmem [shape: f32[2,16], index: 18, kind: input, shape index: {}]   ;;  %s4610_s19 = inlined_call_operand.vmem [shape: bf16[4,16], index: 19, kind: input, shape index: {}]   ;;  %s4611_s20 = inlined_call_operand.vmem [shape: f32[1,16], index: 20, kind: input, shape index: {}]   ;;  %s4612_s21 = inlined_call_operand.hbm [shape: f32[16,16], index: 21, kind: output, shape index: {}]  }
   0x1   :  { %4618 = sst [smem:[#allocation10_spill]] %s4591_s0 }
   0x2   :  { %4619 = sst [smem:[#allocation11_spill]] %s4592_s1 }
   0x3   :  { %4620 = sst [smem:[#allocation12_spill]] %s4593_s2 }
   0x4   :  { %4621 = sst [smem:[#allocation13_spill]] %s4594_s3 }
   0x5   :  { %4622 = sst [smem:[#allocation14_spill]] %s4595_s4 }
   0x6   :  { %4623 = sst [smem:[#allocation15_spill]] %s4596_s5 }
   0x7   :  { %4624 = sst [smem:[#allocation16_spill]] %s4599_s8 }
   0x8   :  { %4625 = sst [smem:[#allocation17_spill]] %s4611_s20 }
   0x9   :  { %4626 = sst [smem:[#allocation18_spill]] %s4612_s21 }
   0xa   :  { %26 = vsyncpa [#allocation5], 0  ;;  %s3912_s2 = smov 0   ;;  %s3914_s25 = smov 0  }
   0xb   :  { %s3916_s26 = smov 0  }
   0xc LB: > { %4627 = sst [smem:[#allocation7_spill]] %s3788_s25  ;;  %s3925_s27 = sadd.s32 4294967295, %s3792_s26   ;;  %s3792_s26 = sphi %s3916_s26, %s4639_s26   ;;  %s3788_s25 = sphi %s3914_s25, %s4641_s25   ;;  %s3784_s2 = sphi %s3912_s2, %s4640_s2  }
   0xd   : > { %s3927_s3 = sadd.s32 1, %s3792_s26   ;;  %s117_s29 = sadd.s32 1, %s3788_s25 }
   0xe   : > { %4628 = sst [smem:[#allocation8_spill]] %s3927_s3  ;;  %s114_s28 = ssub.s32 %s3792_s26, %s3927_s3 }
   0xf   : > { %p115_p0 = scmp.eq.s32.totalorder %s114_s28, 0  ;;  %p124_p1 = scmp.ne.s32.totalorder %s3788_s25, %s3784_s2 }
  0x10   : > { %p125_p2 = scmp.eq.s32.totalorder %s3792_s26, 0  ;;  %p3040_p4 = scmp.ge.s32.totalorder %s3792_s26, 3 }
  0x11   : > { %s3934_s0 = scalar_select %p115_p0, %s3788_s25, %s117_s29  }
  0x12   : > { %p126_p3 = por %p125_p2, %p124_p1  ;;  %579 = sbr.rel (%p3040_p4) target bundleno = 36 (0x24), region = 84 }
  0x13   : > { %4629 = sst [smem:[#allocation9_spill]] %s3934_s0 }
  0x19   : > { %609 = sbr.rel (!%p126_p3) target bundleno = 36 (0x24), region = 100  ;;  %s611_s4 = sand.u32 (%p126_p3), 1, %s3788_s25  }
  0x1a   : > { %s3042_s30 = sshll.u32 (%p126_p3), %s3792_s26, 2  ;;  %s3041_s5 = sshll.u32 (%p126_p3), %s611_s4, 3 }
  0x1b   : > { %s4630_s1 = sld [smem:[#allocation13_spill]] (%p126_p3)  ;;  %s613_s3 = scalar_lea.vmem (%p126_p3), [#allocation3], %s3041_s5 }
  0x21   : > { %s615_s24 = scalar_lea.vmem %s4630_s1, %s3042_s30 }
  0x22   : > { %v631_v0 = vld [vmem:[%s615_s24] sm:$0xf]  ;;  %v633_v1 = vld [vmem:[%s615_s24 + $0xc] sm:$0xf] }
  0x23   : > { %632 = vst [vmem:[%s613_s3] sm:$0xf] %v631_v0  ;;  %634 = vst [vmem:[%s613_s3 + $0x4] sm:$0xf] %v633_v1 }
  0x24 PF: > { %p3043_p5 = scmp.ge.s32.totalorder %s3792_s26, 1  ;;  %p660_p6 = scmp.lt.s32.totalorder %s3792_s26, 4 }
  0x26   : > { %p661_p7 = pnand %p3043_p5, %p660_p6 }
  0x27   : > { %s667_s28 = sand.u32 (!%p661_p7), 1, %s3784_s2   ;;  %s3045_s29 = sshll.u32 (!%p661_p7), %s3925_s27, 4 }
  0x28   : > { %664 = sbr.rel (%p661_p7) target bundleno = 1722 (0x6ba), region = 141  ;;  %s3942_s4 = sshll.u32 (!%p661_p7), %s667_s28, 3 }
  0x29   : > { %p737_p8 = scmp.lt.s32.totalorder (!%p661_p7), %s3045_s29, 47  ;;  %s4631_s23 = sld [smem:[#allocation10_spill]] (!%p661_p7) }
  0x2a   : > { %s4632_s26 = sld [smem:[#allocation11_spill]] (!%p661_p7)  ;;  %s4633_s2 = sld [smem:[#allocation12_spill]] (!%p661_p7) }
  0x2b   : > { %s669_s28 = scalar_lea.vmem (!%p661_p7), [#allocation3], %s3942_s4  ;;  %p3051_p9 = scmp.ne.s32.totalorder (!%p661_p7), %s3925_s27, 0 }
  0x2f   : > { %s4643_s29 = smov (!%p737_p8, %s3045_s29), 47  ;;  %758 = sbr.rel (%p3051_p9) target bundleno = 274 (0x112), region = 149 }
  0x30   : > { %s3046_s30 = sshll.u32 %s4643_s29, 3  ;;  %v762_v2 = vld [vmem:[%s4610_s19] sm:$0x3] (!%p3051_p9)  ;;  %vm767_vm0 = vcmask (!%p3051_p9), 1041408   ;;  %v3794_v4 = vmov (!%p3051_p9), 0.0   ;;  %vm3795_vm1 = vmmov (!%p3051_p9), 0  }
  0x31   : > { %s3947_s3 = scalar_lea.vmem %s4631_s23, %s3046_s30  ;;  %s3952_s0 = scalar_lea.vmem %s4632_s26, %s3046_s30  ;;  %3352 = vmatprep.subr.bf16.mxu0 (!%p3051_p9), %v3794_v4  ;;  %v769_v5 = vsel (!%p3051_p9), %vm767_vm0, %v762_v2, 0  ;;  %3354 = vmatprep.mubr.msk.bf16.mxu0 (!%p3051_p9), %vm3795_vm1, %v3794_v4  ;;  %vm763_vm2 = vcmask (!%p3051_p9), 31744   ;;  %vm815_vm3 = vcmask (!%p3051_p9), 15360   ;;  %v3796_v8 = vmov (!%p3051_p9), 1.0  }
  0x32   : > { %s3957_s20 = scalar_lea.vmem %s4633_s2, %s3046_s30  ;;  %s4634_s23 = sld [smem:[#allocation14_spill]] (!%p3051_p9)  ;;  %3353 = vmatpush3.bf16.msra.mxu0 (!%p3051_p9), %v769_v5  ;;  %816 = vst.msk [vmem:[#allocation2] sm:$0xff] (!%p3051_p9), %vm815_vm3, %v3796_v8  ;;  %817 = vst.msk [vmem:[#allocation2 + $0x8] sm:$0xff] (!%p3051_p9), %vm815_vm3, %v3796_v8  ;;  %vm812_vm4 = vcmask (!%p3051_p9), 130048  }
  0x38   : > { %v759_v3 = vld [vmem:[%s4634_s23] sm:$0xff]  ;;  %v760_v6 = vld [vmem:[%s4634_s23 + $0x8] sm:$0xff] }
  0x39   : > { %v761_v7 = vpack.c.bf16 %v760_v6, %v759_v3 }
  0x3b   : > { %3355 = vmatmul.mubr.msk.bf16.vlgmr.msra.gmra.mrb[0].mxu0 %vm763_vm2, %v761_v7 }
 0x10e   : > { %v805_v9 = vpop.f32.mrb[0].mxu0 }
 0x10f   : > { %813 = vst.msk [vmem:[#allocation4] sm:$0xff] %vm812_vm4, %v805_v9  ;;  %v3356_v10 = vpop.f32.mrb[1].mxu0 }
 0x110   : > { %v808_v11 = vpop.f32.mrb[2].mxu0 }
 0x111   : > { %814 = vst.msk [vmem:[#allocation4 + $0x8] sm:$0xff] %vm812_vm4, %v808_v11  ;;  %v3357_v12 = vpop.f32.mrb[3].mxu0 }
 0x112 PF: > { %v866_v13 = vld [vmem:[%s4602_s11] sm:$0x7]  ;;  %vm899_vm5 = vcmask 1042432   ;;  %v819_v15 = vld [vmem:[%s3947_s3 + $0x8] sm:$0xff]  ;;  %vm874_vm6 = vcmask 48128   ;;  %v820_v18 = vld [vmem:[%s3947_s3 + $0x10] sm:$0xff] }
 0x113   : > { %v818_v14 = vld [vmem:[%s3947_s3] sm:$0xff]  ;;  %3657 = vmatprep.subr.msk.bf16.mxu0 %vm899_vm5, %v866_v13  ;;  %v901_v16 = vsel %vm899_vm5, %v866_v13, 0  ;;  %v821_v19 = vld [vmem:[%s3947_s3 + $0x18] sm:$0xff]  ;;  %v823_v22 = vld [vmem:[%s3947_s3 + $0x28] sm:$0xff]  ;;  %vm1187_vm7 = vcmask 1041408   ;;  %vm1162_vm8 = vcmask 31744  }
 0x114   : > { %v3977_v17 = vpack.c.bf16 %v819_v15, %v818_v14  ;;  %v822_v20 = vld [vmem:[%s3947_s3 + $0x20] sm:$0xff]  ;;  %3359 = vmatpush3.bf16.msra.mxu0 %v901_v16  ;;  %v3982_v21 = vpack.c.bf16 %v821_v19, %v820_v18  ;;  %v824_v24 = vld [vmem:[%s3947_s3 + $0x30] sm:$0xff]  ;;  %v825_v25 = vld [vmem:[%s3947_s3 + $0x38] sm:$0xff]  ;;  %s4635_s22 = sld [smem:[#allocation15_spill]]  ;;  %vm1039_vm9 = vcmask 130048   ;;  %vm1841_vm10 = vcmask 1043456  }
 0x115   : > { %v3987_v23 = vpack.c.bf16 %v823_v22, %v822_v20  ;;  %v826_v26 = vld [vmem:[%s3947_s3 + $0x40] sm:$0xff]  ;;  %v827_v28 = vld [vmem:[%s3947_s3 + $0x48] sm:$0xff]  ;;  %v853_v30 = vpack.c.bf16 %v825_v25, %v824_v24  ;;  %v828_v32 = vld [vmem:[%s3947_s3 + $0x50] sm:$0xff]  ;;  %vm1344_vm11 = vcmask 523264   ;;  %s4636_s8 = sld [smem:[#allocation16_spill]]  ;;  %vm2202_vm12 = vcmask 64512  }
 0x116   : > { %3360 = vmatprep.mubr.msk.bf16.mxu0 %vm874_vm6, %v3977_v17  ;;  %v1161_v27 = vld [vmem:[%s4606_s15] sm:$0x3]  ;;  %v854_v31 = vpack.c.bf16 %v827_v28, %v826_v26  ;;  %v829_v33 = vld [vmem:[%s3947_s3 + $0x58] sm:$0xff]  ;;  %v831_v35 = vld [vmem:[%s3947_s3 + $0x68] sm:$0xff]  ;;  %p3185_p10 = scmp.ne.s32.totalorder %s3925_s27, 2 }
 0x117   : > { %3361 = vmatmul.mubr.msk.bf16.vlgmr.msra.gmra.mrb[0].mxu0 %vm874_vm6, %v3982_v21  ;;  %3658 = vmatprep.subr.msk.bf16.mxu0 %vm1187_vm7, %v1161_v27  ;;  %v1189_v29 = vsel %vm1187_vm7, %v1161_v27, 0  ;;  %v830_v34 = vld [vmem:[%s3947_s3 + $0x60] sm:$0xff]  ;;  %v855_v36 = vpack.c.bf16 %v829_v33, %v828_v32  ;;  %v832_v38 = vld [vmem:[%s3947_s3 + $0x70] sm:$0xff]  ;;  %v833_v39 = vld [vmem:[%s3947_s3 + $0x78] sm:$0xff]  ;;  %s4637_s1 = sld [smem:[#allocation17_spill]] (!%p3185_p10) }
 0x118   : > { %3364 = vmatprep.mubr.msk.bf16.mxu0 %vm874_vm6, %v3987_v23  ;;  %3395 = vmatpush3.bf16.msra.mxu0 %v1189_v29  ;;  %v856_v37 = vpack.c.bf16 %v831_v35, %v830_v34  ;;  %v857_v40 = vpack.c.bf16 %v833_v39, %v832_v38  ;;  %v3698_v41 = vld [vmem:[%s4604_s13] sm:$0xff]   ;;  %v4018_v43 = vld [vmem:[%s3952_s0 + $0x8] sm:$0xff]  ;;  %v4022_v45 = vld [vmem:[%s3952_s0 + $0x10] sm:$0xff] }
 0x119   : > { %v834_v42 = vld [vmem:[%s3952_s0] sm:$0xff]  ;;  %3376 = vmatprep.subr.bf16.mxu1 %v3698_v41  ;;  %v4025_v46 = vld [vmem:[%s3952_s0 + $0x18] sm:$0xff]  ;;  %v4035_v49 = vld [vmem:[%s3952_s0 + $0x28] sm:$0xff] }
 0x11a   : > { %v858_v44 = vpack.c.bf16 %v4018_v43, %v834_v42  ;;  %3377 = vmatpush3.bf16.msra.mxu1 %v3698_v41  ;;  %v859_v47 = vpack.c.bf16 %v4025_v46, %v4022_v45  ;;  %v4032_v48 = vld [vmem:[%s3952_s0 + $0x20] sm:$0xff]  ;;  %v4040_v51 = vld [vmem:[%s3952_s0 + $0x30] sm:$0xff]  ;;  %v4043_v52 = vld [vmem:[%s3952_s0 + $0x38] sm:$0xff] }
 0x11b   : > { %v860_v50 = vpack.c.bf16 %v4035_v49, %v4032_v48  ;;  %v1466_v53 = vld [vmem:[%s4635_s22] sm:$0x7]  ;;  %v861_v54 = vpack.c.bf16 %v4043_v52, %v4040_v51  ;;  %v4058_v57 = vld [vmem:[%s3952_s0 + $0x48] sm:$0xff]  ;;  %v4063_v59 = vld [vmem:[%s3952_s0 + $0x50] sm:$0xff] }
 0x11c   : > { %3659 = vmatprep.subr.msk.bf16.mxu0 %vm899_vm5, %v1466_v53  ;;  %v1475_v55 = vsel %vm899_vm5, %v1466_v53, 0  ;;  %v4055_v56 = vld [vmem:[%s3952_s0 + $0x40] sm:$0xff]  ;;  %v4066_v60 = vld [vmem:[%s3952_s0 + $0x58] sm:$0xff]  ;;  %v4076_v63 = vld [vmem:[%s3952_s0 + $0x68] sm:$0xff]  ;;  %vm2509_vm5 = vcmask 15360  }
 0x11d   : > { %v862_v58 = vpack.c.bf16 %v4058_v57, %v4055_v56  ;;  %v863_v61 = vpack.c.bf16 %v4066_v60, %v4063_v59  ;;  %v4073_v62 = vld [vmem:[%s3952_s0 + $0x60] sm:$0xff]  ;;  %v4081_v1 = vld [vmem:[%s3952_s0 + $0x70] sm:$0xff]  ;;  %v4084_v2 = vld [vmem:[%s3952_s0 + $0x78] sm:$0xff] }
 0x11e   : > { %v864_v0 = vpack.c.bf16 %v4076_v63, %v4073_v62  ;;  %v865_v3 = vpack.c.bf16 %v4084_v2, %v4081_v1  ;;  %v3699_v4 = vld [vmem:[%s4607_s16] sm:$0xff]  }
 0x11f   : > { %3365 = vmatmul.mubr.msk.bf16.gmra.mrb[4].mxu0 %vm874_vm6, %v853_v30  ;;  %3412 = vmatprep.subr.bf16.mxu1 %v3699_v4  ;;  %v4108_v5 = vld [vmem:[%s4603_s12] ss:$0 sm:$0xff] }
 0x120   : > { %3368 = vmatprep.mubr.msk.bf16.mxu0 %vm874_vm6, %v854_v31 }
 0x127   : > { %3369 = vmatmul.mubr.msk.bf16.gmra.mrb[8].mxu0 %vm874_vm6, %v855_v36 }
 0x128   : > { %3372 = vmatprep.mubr.msk.bf16.mxu0 %vm874_vm6, %v856_v37 }
 0x12f   : > { %3373 = vmatmul.mubr.msk.bf16.gmra.mrb[12].mxu0 %vm874_vm6, %v857_v40 }
 0x130   : > { %3396 = vmatprep.mubr.msk.bf16.mxu0 %vm1162_vm8, %v858_v44 }
 0x137   : > { %3397 = vmatmul.mubr.msk.bf16.vlgmr.msra.gmra.mrb[16].mxu0 %vm1162_vm8, %v859_v47 }
 0x138   : > { %3400 = vmatprep.mubr.msk.bf16.mxu0 %vm1162_vm8, %v860_v50  ;;  %3437 = vmatpush3.bf16.msra.mxu0 %v1475_v55 }
 0x13f   : > { %3401 = vmatmul.mubr.msk.bf16.gmra.mrb[20].mxu0 %vm1162_vm8, %v861_v54 }
 0x140   : > { %3404 = vmatprep.mubr.msk.bf16.mxu0 %vm1162_vm8, %v862_v58 }
 0x147   : > { %3405 = vmatmul.mubr.msk.bf16.gmra.mrb[24].mxu0 %vm1162_vm8, %v863_v61 }
 0x148   : > { %3408 = vmatprep.mubr.msk.bf16.mxu0 %vm1162_vm8, %v864_v0 }
 0x14f   : > { %3409 = vmatmul.mubr.msk.bf16.gmra.mrb[28].mxu0 %vm1162_vm8, %v865_v3 }
 0x150   : > { %3438 = vmatprep.mubr.msk.bf16.mxu0 %vm874_vm6, %v3977_v17 }
 0x157   : > { %3439 = vmatmul.mubr.msk.bf16.vlgmr.msra.gmra.mrb[32].mxu0 %vm874_vm6, %v3982_v21 }
 0x158   : > { %3442 = vmatprep.mubr.msk.bf16.mxu0 %vm874_vm6, %v3987_v23  ;;  %v3700_v23 = vld [vmem:[%s4607_s16 + $0x8] sm:$0xff]  }
 0x15f   : > { %3443 = vmatmul.mubr.msk.bf16.gmra.mrb[36].mxu0 %vm874_vm6, %v853_v30 }
 0x160   : > { %3446 = vmatprep.mubr.msk.bf16.mxu0 %vm874_vm6, %v854_v31  ;;  %v3701_v31 = vld [vmem:[%s4607_s16 + $0x10] sm:$0xff]  }
 0x167   : > { %3447 = vmatmul.mubr.msk.bf16.gmra.mrb[40].mxu0 %vm874_vm6, %v855_v36 }
 0x168   : > { %3450 = vmatprep.mubr.msk.bf16.mxu0 %vm874_vm6, %v856_v37 }
 0x16f   : > { %3451 = vmatmul.mubr.msk.bf16.gmra.mrb[44].mxu0 %vm874_vm6, %v857_v40 }
 0x170   : > { %3484 = vmatprep.mubr.msk.f32.mxu0 %vm1162_vm8, %v834_v42 }
 0x1ea   : > { %v3362_v6 = vpop.f32.mrb[0].mxu0 }
 0x1eb   : > { %v946_v7 = vadd.f32 %v3362_v6, %v4108_v5  ;;  %v937_v8 = vpop.f32.mrb[1].mxu0 }
 0x1ec   : > { %v938_v9 = vadd.f32 %v4108_v5, %v937_v8  ;;  %v3363_v10 = vpop.f32.mrb[2].mxu0 }
 0x1ed   : > { %v949_v11 = vadd.f32 %v3363_v10, %v4108_v5  ;;  %v940_v12 = vpop.f32.mrb[3].mxu0  ;;  %v1002_v14 = vmax.f32 %v946_v7, 0.0 }
 0x1ee   : > { %v941_v13 = vadd.f32 %v4108_v5, %v940_v12  ;;  %v1000_v16 = vmax.f32 %v938_v9, 0.0 }
 0x1ef   : > { %v1003_v15 = vmax.f32 %v949_v11, 0.0 }
 0x1f0   : > { %v1001_v17 = vmax.f32 %v941_v13, 0.0 }
 0x1f1   : > { %v1017_v18 = vpack.c.bf16 %v1003_v15, %v1002_v14 }
 0x1f2   : > { %v3366_v19 = vpop.f32.mrb[4].mxu0  ;;  %v1016_v20 = vpack.c.bf16 %v1001_v17, %v1000_v16 }
 0x1f3   : > { %v962_v21 = vadd.f32 %v3366_v19, %v4108_v5  ;;  %v953_v22 = vpop.f32.mrb[5].mxu0 }
 0x1f4   : > { %v954_v24 = vadd.f32 %v4108_v5, %v953_v22  ;;  %v3367_v25 = vpop.f32.mrb[6].mxu0  ;;  %3378 = vmatprep.mubr.msk.bf16.mxu1 %vm1039_vm9, %v1016_v20 }
 0x1f5   : > { %v965_v26 = vadd.f32 %v3367_v25, %v4108_v5  ;;  %v956_v27 = vpop.f32.mrb[7].mxu0  ;;  %3379 = vmatmul.mubr.msk.bf16.vlgmr.msra.gmra.mrb[0].mxu1 %vm1039_vm9, %v1017_v18  ;;  %v1006_v29 = vmax.f32 %v962_v21, 0.0  ;;  %v1591_v25 = vld [vmem:[%s4598_s7 + $0x8] sm:$0xff] }
 0x1f6   : > { %v957_v28 = vadd.f32 %v4108_v5, %v956_v27  ;;  %3413 = vmatpush3.bf16.msra.mxu1 %v3699_v4  ;;  %v1004_v32 = vmax.f32 %v954_v24, 0.0  ;;  %v1590_v24 = vld [vmem:[%s4598_s7] sm:$0xff] }
 0x1f7   : > { %v1007_v30 = vmax.f32 %v965_v26, 0.0  ;;  %3414 = vmatprep.subr.bf16.mxu1 %v3700_v23  ;;  %v1792_v26 = vld [vmem:[%s4600_s9] sm:$0xf] }
 0x1f8   : > { %v1005_v33 = vmax.f32 %v957_v28, 0.0  ;;  %v4170_v28 = vpack.c.bf16 %v1591_v25, %v1590_v24  ;;  %3482 = vmatprep.subr.msk.mxu0 %vm1841_vm10, %v1792_v26 }
 0x1f9   : > { %v1019_v34 = vpack.c.bf16 %v1007_v30, %v1006_v29  ;;  %3483 = vmatpush3.msk.msra.mxu0 %vm1841_vm10, %v1792_v26 }
 0x1fa   : > { %v1018_v35 = vpack.c.bf16 %v1005_v33, %v1004_v32  ;;  %v3370_v36 = vpop.f32.mrb[8].mxu0  ;;  %3415 = vmatpush3.bf16.msra.mxu1 %v3700_v23  ;;  %3485 = vmatmul.mubr.msk.f32.vlgmr.msra.gmra.mrb[48].mxu0 %vm1162_vm8, %v4018_v43 }
 0x1fb   : > { %v978_v37 = vadd.f32 %v3370_v36, %v4108_v5  ;;  %v969_v38 = vpop.f32.mrb[9].mxu0  ;;  %3416 = vmatprep.subr.bf16.mxu1 %v3701_v31  ;;  %3487 = vmatprep.mubr.msk.f32.mxu0 %vm1162_vm8, %v4022_v45 }
 0x1fc   : > { %v970_v39 = vadd.f32 %v4108_v5, %v969_v38  ;;  %v3371_v40 = vpop.f32.mrb[10].mxu0  ;;  %3382 = vmatprep.mubr.msk.bf16.mxu1 %vm1039_vm9, %v1018_v35 }
 0x1fd   : > { %v981_v41 = vadd.f32 %v3371_v40, %v4108_v5  ;;  %v972_v42 = vpop.f32.mrb[11].mxu0  ;;  %3383 = vmatmul.mubr.msk.bf16.gmra.mrb[4].mxu1 %vm1039_vm9, %v1019_v34  ;;  %v1010_v47 = vmax.f32 %v978_v37, 0.0 }
 0x1fe   : > { %v973_v44 = vadd.f32 %v4108_v5, %v972_v42  ;;  %3417 = vmatpush3.bf16.msra.mxu1 %v3701_v31  ;;  %v1008_v53 = vmax.f32 %v970_v39, 0.0  ;;  %3488 = vmatmul.mubr.msk.f32.gmra.mrb[50].mxu0 %vm1162_vm8, %v4025_v46 }
 0x1ff   : > { %v1011_v50 = vmax.f32 %v981_v41, 0.0  ;;  %3490 = vmatprep.mubr.msk.f32.mxu0 %vm1162_vm8, %v4032_v48 }
 0x200   : > { %v1009_v54 = vmax.f32 %v973_v44, 0.0 }
 0x201   : > { %v1021_v55 = vpack.c.bf16 %v1011_v50, %v1010_v47 }
 0x202   : > { %v1020_v58 = vpack.c.bf16 %v1009_v54, %v1008_v53  ;;  %v3374_v61 = vpop.f32.mrb[12].mxu0  ;;  %3491 = vmatmul.mubr.msk.f32.gmra.mrb[52].mxu0 %vm1162_vm8, %v4035_v49 }
 0x203   : > { %v994_v0 = vadd.f32 %v3374_v61, %v4108_v5  ;;  %v985_v3 = vpop.f32.mrb[13].mxu0  ;;  %3493 = vmatprep.mubr.msk.f32.mxu0 %vm1162_vm8, %v4040_v51  ;;  %v2007_v61 = vld [vmem:[%s4608_s17] sm:$0xff] }
 0x204   : > { %v986_v4 = vadd.f32 %v4108_v5, %v985_v3  ;;  %v3375_v6 = vpop.f32.mrb[14].mxu0  ;;  %3386 = vmatprep.mubr.msk.bf16.mxu1 %vm1039_vm9, %v1020_v58 }
 0x205   : > { %v997_v7 = vadd.f32 %v3375_v6, %v4108_v5  ;;  %v988_v8 = vpop.f32.mrb[15].mxu0  ;;  %3387 = vmatmul.mubr.msk.bf16.gmra.mrb[8].mxu1 %vm1039_vm9, %v1021_v55  ;;  %v1014_v10 = vmax.f32 %v994_v0, 0.0  ;;  %v2008_v0 = vld [vmem:[%s4608_s17 + $0x8] sm:$0xff] }
 0x206   : > { %v989_v9 = vadd.f32 %v4108_v5, %v988_v8  ;;  %v1012_v12 = vmax.f32 %v986_v4, 0.0  ;;  %v3702_v5 = vld [vmem:[%s4607_s16 + $0x18] sm:$0xff]   ;;  %3494 = vmatmul.mubr.msk.f32.gmra.mrb[54].mxu0 %vm1162_vm8, %v4043_v52 }
 0x207   : > { %v1015_v11 = vmax.f32 %v997_v7, 0.0  ;;  %3418 = vmatprep.subr.bf16.mxu1 %v3702_v5  ;;  %3496 = vmatprep.mubr.msk.f32.mxu0 %vm1162_vm8, %v4055_v56 }
 0x208   : > { %v1013_v13 = vmax.f32 %v989_v9, 0.0  ;;  %3419 = vmatpush3.bf16.msra.mxu1 %v3702_v5  ;;  %v4269_v9 = vpack.c.bf16 %v2008_v0, %v2007_v61 }
 0x209   : > { %v1023_v14 = vpack.c.bf16 %v1015_v11, %v1014_v10  ;;  %3634 = vmatprep.subr.bf16.mxu1 %v4170_v28 }
 0x20a   : > { %v1022_v15 = vpack.c.bf16 %v1013_v13, %v1012_v12  ;;  %v4140_v16 = vpop.f32.mrb[16].mxu0  ;;  %3497 = vmatmul.mubr.msk.f32.gmra.mrb[56].mxu0 %vm1162_vm8, %v4058_v57 }
 0x20b   : > { %v4142_v17 = vpop.f32.mrb[17].mxu0  ;;  %3499 = vmatprep.mubr.msk.f32.mxu0 %vm1162_vm8, %v4063_v59 }
 0x20c   : > { %3390 = vmatprep.mubr.msk.bf16.mxu1 %vm1039_vm9, %v1022_v15  ;;  %v4144_v18 = vpop.f32.mrb[18].mxu0 }
 0x20d   : > { %3391 = vmatmul.mubr.msk.bf16.gmra.mrb[12].mxu1 %vm1039_vm9, %v1023_v14  ;;  %v4146_v19 = vpop.f32.mrb[19].mxu0 }
 0x20e   : > { %3500 = vmatmul.mubr.msk.f32.gmra.mrb[58].mxu0 %vm1162_vm8, %v4066_v60 }
 0x20f   : > { %3502 = vmatprep.mubr.msk.f32.mxu0 %vm1162_vm8, %v4073_v62 }
 0x212   : > { %v4151_v20 = vpop.f32.mrb[20].mxu0  ;;  %3503 = vmatmul.mubr.msk.f32.gmra.mrb[60].mxu0 %vm1162_vm8, %v4076_v63 }
 0x213   : > { %v4153_v21 = vpop.f32.mrb[21].mxu0  ;;  %3505 = vmatprep.mubr.msk.f32.mxu0 %vm1162_vm8, %v4081_v1  ;;  %v4252_v1 = vld [vmem:[%s4605_s14] ss:$0 sm:$0xff] }
 0x214   : > { %v4155_v22 = vpop.f32.mrb[22].mxu0 }
 0x215   : > { %v4157_v23 = vpop.f32.mrb[23].mxu0 }
 0x216   : > { %3506 = vmatmul.mubr.msk.f32.gmra.mrb[62].mxu0 %vm1162_vm8, %v4084_v2 }
 0x21a   : > { %v4168_v27 = vpop.f32.mrb[24].mxu0 }
 0x21b   : > { %v4172_v29 = vpop.f32.mrb[25].mxu0 }
 0x21c   : > { %v4174_v30 = vpop.f32.mrb[26].mxu0 }
 0x21d   : > { %v4177_v31 = vpop.f32.mrb[27].mxu0 }
 0x222   : > { %v4185_v32 = vpop.f32.mrb[28].mxu0 }
 0x223   : > { %v4189_v33 = vpop.f32.mrb[29].mxu0 }
 0x224   : > { %v4191_v34 = vpop.f32.mrb[30].mxu0 }
 0x225   : > { %v4193_v35 = vpop.f32.mrb[31].mxu0 }
 0x22a   : > { %v4201_v43 = vpop.f32.mrb[32].mxu0 }
 0x22b   : > { %v4205_v45 = vpop.f32.mrb[33].mxu0 }
 0x22c   : > { %v4207_v46 = vpop.f32.mrb[34].mxu0 }
 0x22d   : > { %v4209_v48 = vpop.f32.mrb[35].mxu0 }
 0x232   : > { %v4217_v49 = vpop.f32.mrb[36].mxu0 }
 0x233   : > { %v4221_v51 = vpop.f32.mrb[37].mxu0 }
 0x234   : > { %v4223_v52 = vpop.f32.mrb[38].mxu0 }
 0x235   : > { %v4225_v56 = vpop.f32.mrb[39].mxu0 }
 0x23a   : > { %v4233_v57 = vpop.f32.mrb[40].mxu0 }
 0x23b   : > { %v4235_v59 = vpop.f32.mrb[41].mxu0 }
 0x23c   : > { %v4237_v60 = vpop.f32.mrb[42].mxu0 }
 0x23d   : > { %v4239_v62 = vpop.f32.mrb[43].mxu0 }
 0x242   : > { %v4241_v36 = vpop.f32.mrb[44].mxu0 }
 0x243   : > { %v4243_v37 = vpop.f32.mrb[45].mxu0 }
 0x244   : > { %v4245_v38 = vpop.f32.mrb[46].mxu0 }
 0x245   : > { %v4247_v63 = vpop.f32.mrb[47].mxu0 }
 0x2c8   : > { %v3380_v2 = vpop.f32.mrb[0].mxu1 }
 0x2c9   : > { %v1107_v39 = vadd.f32 %v3380_v2, %v4252_v1  ;;  %v1098_v40 = vpop.f32.mrb[1].mxu1 }
 0x2ca   : > { %v1099_v41 = vadd.f32 %v4252_v1, %v1098_v40  ;;  %v3381_v42 = vpop.f32.mrb[2].mxu1 }
 0x2cb   : > { %v1290_v44 = vmul.f32 %v4140_v16, %v1107_v39  ;;  %v1110_v47 = vadd.f32 %v3381_v42, %v4252_v1  ;;  %v1101_v50 = vpop.f32.mrb[3].mxu1 }
 0x2cc   : > { %v1288_v53 = vmul.f32 %v4142_v17, %v1099_v41  ;;  %v1102_v54 = vadd.f32 %v4252_v1, %v1101_v50 }
 0x2cd   : > { %v1291_v55 = vmul.f32 %v4144_v18, %v1110_v47 }
 0x2ce   : > { %v1289_v58 = vmul.f32 %v4146_v19, %v1102_v54 }
 0x2cf   : > { %v1305_v3 = vpack.c.bf16 %v1291_v55, %v1290_v44 }
 0x2d0   : > { %v1304_v4 = vpack.c.bf16 %v1289_v58, %v1288_v53  ;;  %v3384_v6 = vpop.f32.mrb[4].mxu1 }
 0x2d1   : > { %v1123_v7 = vadd.f32 %v3384_v6, %v4252_v1  ;;  %v1114_v8 = vpop.f32.mrb[5].mxu1 }
 0x2d2   : > { %v1115_v10 = vadd.f32 %v4252_v1, %v1114_v8  ;;  %v3385_v11 = vpop.f32.mrb[6].mxu1  ;;  %3420 = vmatprep.mubr.msk.bf16.mxu1 %vm1344_vm11, %v1304_v4 }
 0x2d3   : > { %v1294_v12 = vmul.f32 %v4151_v20, %v1123_v7  ;;  %v1126_v13 = vadd.f32 %v3385_v11, %v4252_v1  ;;  %v1117_v14 = vpop.f32.mrb[7].mxu1  ;;  %3421 = vmatmul.mubr.msk.bf16.vlgmr.msra.gmra.mrb[16].mxu1 %vm1344_vm11, %v1305_v3 }
 0x2d4   : > { %v1292_v15 = vmul.f32 %v4153_v21, %v1115_v10  ;;  %v1118_v16 = vadd.f32 %v4252_v1, %v1117_v14  ;;  %3636 = vmatpush3.bf16.msra.mxu1 %v4170_v28 }
 0x2d5   : > { %v1295_v17 = vmul.f32 %v4155_v22, %v1126_v13  ;;  %3638 = vmatprep.subr.bf16.mxu1 %v4269_v9 }
 0x2d6   : > { %v1293_v18 = vmul.f32 %v4157_v23, %v1118_v16 }
 0x2d7   : > { %v1307_v19 = vpack.c.bf16 %v1295_v17, %v1294_v12 }
 0x2d8   : > { %v1306_v5 = vpack.c.bf16 %v1293_v18, %v1292_v15  ;;  %v3388_v20 = vpop.f32.mrb[8].mxu1 }
 0x2d9   : > { %v1139_v24 = vadd.f32 %v3388_v20, %v4252_v1  ;;  %v1130_v25 = vpop.f32.mrb[9].mxu1 }
 0x2da   : > { %v1131_v26 = vadd.f32 %v4252_v1, %v1130_v25  ;;  %v3389_v2 = vpop.f32.mrb[10].mxu1  ;;  %3424 = vmatprep.mubr.msk.bf16.mxu1 %vm1344_vm11, %v1306_v5 }
 0x2db   : > { %v1298_v21 = vmul.f32 %v4168_v27, %v1139_v24  ;;  %v1142_v28 = vadd.f32 %v3389_v2, %v4252_v1  ;;  %v1133_v22 = vpop.f32.mrb[11].mxu1  ;;  %3425 = vmatmul.mubr.msk.bf16.gmra.mrb[20].mxu1 %vm1344_vm11, %v1307_v19  ;;  %v3092_v27 = vld [vmem:[%s4597_s6] ss:$0 sm:$0xff] }
 0x2dc   : > { %v1296_v23 = vmul.f32 %v4172_v29, %v1131_v26  ;;  %v1134_v39 = vadd.f32 %v4252_v1, %v1133_v22  ;;  %v1512_v0 = vadd.f32 %v3092_v27, %v4205_v45  ;;  %v1523_v45 = vadd.f32 %v4207_v46, %v3092_v27 }
 0x2dd   : > { %v1299_v40 = vmul.f32 %v4174_v30, %v1142_v28  ;;  %v1531_v12 = vadd.f32 %v3092_v27, %v4225_v56  ;;  %v1539_v46 = vadd.f32 %v4223_v52, %v3092_v27  ;;  %v1547_v56 = vadd.f32 %v3092_v27, %v4239_v62 }
 0x2de   : > { %v1297_v41 = vmul.f32 %v4177_v31, %v1134_v39  ;;  %v1574_v8 = vmax.f32 %v1512_v0, 0.0  ;;  %v1577_v11 = vmax.f32 %v1523_v45, 0.0  ;;  %v1555_v52 = vadd.f32 %v4237_v60, %v3092_v27 }
 0x2df   : > { %v1309_v42 = vpack.c.bf16 %v1299_v40, %v1298_v21  ;;  %v1583_v15 = vmax.f32 %v1547_v56, 0.0  ;;  %v1563_v62 = vadd.f32 %v3092_v27, %v4247_v63  ;;  %v2006_v63 = vld [vmem:[%s4601_s10] sm:$0xff] }
 0x2e0   : > { %v1308_v44 = vpack.c.bf16 %v1297_v41, %v1296_v23  ;;  %v3392_v47 = vpop.f32.mrb[12].mxu1  ;;  %v1585_v18 = vmax.f32 %v1555_v52, 0.0 }
 0x2e1   : > { %v1155_v50 = vadd.f32 %v3392_v47, %v4252_v1  ;;  %v1146_v53 = vpop.f32.mrb[13].mxu1  ;;  %v1587_v19 = vmax.f32 %v1563_v62, 0.0  ;;  %v2508_v47 = vld [vmem:[%s4609_s18] sm:$0x3] }
 0x2e2   : > { %v1147_v54 = vadd.f32 %v4252_v1, %v1146_v53  ;;  %v3393_v55 = vpop.f32.mrb[14].mxu1  ;;  %3428 = vmatprep.mubr.msk.bf16.mxu1 %vm1344_vm11, %v1308_v44  ;;  %3562 = vmatprep.subr.msk.mxu0 %vm1187_vm7, %v2508_v47 }
 0x2e3   : > { %v1302_v29 = vmul.f32 %v4185_v32, %v1155_v50  ;;  %v1158_v30 = vadd.f32 %v3393_v55, %v4252_v1  ;;  %v1149_v31 = vpop.f32.mrb[15].mxu1  ;;  %3429 = vmatmul.mubr.msk.bf16.gmra.mrb[24].mxu1 %vm1344_vm11, %v1309_v42  ;;  %v1515_v32 = vadd.f32 %v3092_v27, %v4209_v48  ;;  %v1536_v48 = vadd.f32 %v4217_v49, %v3092_v27 }
 0x2e4   : > { %v1300_v58 = vmul.f32 %v4189_v33, %v1147_v54  ;;  %v1150_v61 = vadd.f32 %v4252_v1, %v1149_v31  ;;  %v1520_v33 = vadd.f32 %v4201_v43, %v3092_v27  ;;  %v1528_v1 = vadd.f32 %v3092_v27, %v4221_v51  ;;  %3563 = vmatpush3.msk.msra.mxu0 %vm1187_vm7, %v2508_v47 }
 0x2e5   : > { %v1303_v3 = vmul.f32 %v4191_v34, %v1158_v30  ;;  %v1575_v34 = vmax.f32 %v1515_v32, 0.0  ;;  %v1544_v43 = vadd.f32 %v3092_v27, %v4235_v59  ;;  %v1579_v51 = vmax.f32 %v1531_v12, 0.0  ;;  %v3101_v32 = vld [vmem:[%s4636_s8] ss:$0 sm:$0xff] }
 0x2e6   : > { %v1301_v4 = vmul.f32 %v4193_v35, %v1150_v61  ;;  %v1576_v10 = vmax.f32 %v1520_v33, 0.0  ;;  %v1578_v35 = vmax.f32 %v1528_v1, 0.0  ;;  %v1580_v13 = vmax.f32 %v1536_v48, 0.0 }
 0x2e7   : > { %v1311_v6 = vpack.c.bf16 %v1303_v3, %v1302_v29  ;;  %v1582_v14 = vmax.f32 %v1544_v43, 0.0  ;;  %v1552_v49 = vadd.f32 %v4233_v57, %v3092_v27  ;;  %v1560_v59 = vadd.f32 %v3092_v27, %v4243_v37 }
 0x2e8   : > { %v1310_v7 = vpack.c.bf16 %v1301_v4, %v1300_v58  ;;  %v1568_v57 = vadd.f32 %v4241_v36, %v3092_v27  ;;  %v1571_v37 = vadd.f32 %v4245_v38, %v3092_v27  ;;  %v3486_v36 = vpop.f32.mrb[48].mxu0 }
 0x2e9   : > { %v1584_v16 = vmax.f32 %v1552_v49, 0.0  ;;  %v1586_v17 = vmax.f32 %v1560_v59, 0.0  ;;  %v1911_v20 = vpop.f32.mrb[49].mxu0 }
 0x2ea   : > { %3432 = vmatprep.mubr.msk.bf16.mxu1 %vm1344_vm11, %v1310_v7  ;;  %v1588_v60 = vmax.f32 %v1568_v57, 0.0  ;;  %v1589_v5 = vmax.f32 %v1571_v37, 0.0  ;;  %v4343_v24 = vpop.f32.mrb[50].mxu0 }
 0x2eb   : > { %3433 = vmatmul.mubr.msk.bf16.gmra.mrb[28].mxu1 %vm1344_vm11, %v1311_v6  ;;  %v4345_v25 = vpop.f32.mrb[51].mxu0 }
 0x2ec   : > { %3458 = vmatprep.mubr.msk.f32.mxu1 %vm1039_vm9, %v1574_v8  ;;  %v4347_v38 = vpop.f32.mrb[52].mxu0 }
 0x2ed   : > { %v4349_v26 = vpop.f32.mrb[53].mxu0 }
 0x2ee   : > { %v4351_v2 = vpop.f32.mrb[54].mxu0 }
 0x2ef   : > { %v4353_v21 = vpop.f32.mrb[55].mxu0 }
 0x2f0   : > { %v4355_v28 = vpop.f32.mrb[56].mxu0 }
 0x2f1   : > { %v4357_v22 = vpop.f32.mrb[57].mxu0 }
 0x2f2   : > { %v4359_v23 = vpop.f32.mrb[58].mxu0 }
 0x2f3   : > { %3459 = vmatmul.mubr.msk.f32.vlgmr.msra.gmra.mrb[32].mxu1 %vm1039_vm9, %v1575_v34  ;;  %v4361_v39 = vpop.f32.mrb[59].mxu0 }
 0x2f4   : > { %3461 = vmatprep.mubr.msk.f32.mxu1 %vm1039_vm9, %v1576_v10  ;;  %3640 = vmatpush3.bf16.msra.mxu1 %v4269_v9  ;;  %v1581_v9 = vmax.f32 %v1539_v46, 0.0  ;;  %v4363_v40 = vpop.f32.mrb[60].mxu0 }
 0x2f5   : > { %3536 = vmatprep.subr.mxu1 %v2006_v63  ;;  %v4365_v41 = vpop.f32.mrb[61].mxu0 }
 0x2f6   : > { %v4367_v42 = vpop.f32.mrb[62].mxu0 }
 0x2f7   : > { %3462 = vmatmul.mubr.msk.f32.gmra.mrb[34].mxu1 %vm1039_vm9, %v1577_v11  ;;  %v4369_v44 = vpop.f32.mrb[63].mxu0 }
 0x2f8   : > { %3464 = vmatprep.mubr.msk.f32.mxu1 %vm1039_vm9, %v1578_v35 }
 0x2fb   : > { %3465 = vmatmul.mubr.msk.f32.gmra.mrb[36].mxu1 %vm1039_vm9, %v1579_v51 }
 0x2fc   : > { %3467 = vmatprep.mubr.msk.f32.mxu1 %vm1039_vm9, %v1580_v13 }
 0x2ff   : > { %3468 = vmatmul.mubr.msk.f32.gmra.mrb[38].mxu1 %vm1039_vm9, %v1581_v9 }
 0x300   : > { %3470 = vmatprep.mubr.msk.f32.mxu1 %vm1039_vm9, %v1582_v14 }
 0x303   : > { %3471 = vmatmul.mubr.msk.f32.gmra.mrb[40].mxu1 %vm1039_vm9, %v1583_v15 }
 0x304   : > { %3473 = vmatprep.mubr.msk.f32.mxu1 %vm1039_vm9, %v1584_v16 }
 0x307   : > { %3474 = vmatmul.mubr.msk.f32.gmra.mrb[42].mxu1 %vm1039_vm9, %v1585_v18 }
 0x308   : > { %3476 = vmatprep.mubr.msk.f32.mxu1 %vm1039_vm9, %v1586_v17 }
 0x30b   : > { %3477 = vmatmul.mubr.msk.f32.gmra.mrb[44].mxu1 %vm1039_vm9, %v1587_v19 }
 0x30c   : > { %3479 = vmatprep.mubr.msk.f32.mxu1 %vm1039_vm9, %v1588_v60 }
 0x30f   : > { %3480 = vmatmul.mubr.msk.f32.gmra.mrb[46].mxu1 %vm1039_vm9, %v1589_v5 }
 0x3a6   : > { %v4376_v50 = vpop.f32.mrb[16].mxu1 }
 0x3a7   : > { %v4378_v53 = vpop.f32.mrb[17].mxu1 }
 0x3a8   : > { %v4380_v27 = vpop.f32.mrb[18].mxu1  ;;  %3512 = vmatprep.mubr.msk.f32.mxu1 %vm1039_vm9, %v4378_v53 }
 0x3a9   : > { %v4384_v54 = vpop.f32.mrb[19].mxu1 }
 0x3aa   : > { %3513 = vmatmul.mubr.msk.f32.vlgmr.msra.gmra.mrb[48].mxu1 %vm1039_vm9, %v4384_v54 }
 0x3ab   : > { %3515 = vmatprep.mubr.msk.f32.mxu1 %vm1039_vm9, %v4376_v50  ;;  %3537 = vmatpush3.msra.mxu1 %v2006_v63 }
 0x3ae   : > { %v4390_v55 = vpop.f32.mrb[20].mxu1  ;;  %3516 = vmatmul.mubr.msk.f32.gmra.mrb[50].mxu1 %vm1039_vm9, %v4380_v27 }
 0x3af   : > { %v4394_v29 = vpop.f32.mrb[21].mxu1 }
 0x3b0   : > { %v4396_v30 = vpop.f32.mrb[22].mxu1  ;;  %3518 = vmatprep.mubr.msk.f32.mxu1 %vm1039_vm9, %v4394_v29 }
 0x3b1   : > { %v4400_v31 = vpop.f32.mrb[23].mxu1 }
 0x3b2   : > { %3519 = vmatmul.mubr.msk.f32.gmra.mrb[52].mxu1 %vm1039_vm9, %v4400_v31 }
 0x3b3   : > { %3521 = vmatprep.mubr.msk.f32.mxu1 %vm1039_vm9, %v4390_v55 }
 0x3b6   : > { %v4406_v58 = vpop.f32.mrb[24].mxu1  ;;  %3522 = vmatmul.mubr.msk.f32.gmra.mrb[54].mxu1 %vm1039_vm9, %v4396_v30 }
 0x3b7   : > { %v4410_v61 = vpop.f32.mrb[25].mxu1 }
 0x3b8   : > { %v4412_v0 = vpop.f32.mrb[26].mxu1  ;;  %3524 = vmatprep.mubr.msk.f32.mxu1 %vm1039_vm9, %v4410_v61 }
 0x3b9   : > { %v4416_v3 = vpop.f32.mrb[27].mxu1 }
 0x3ba   : > { %3525 = vmatmul.mubr.msk.f32.gmra.mrb[56].mxu1 %vm1039_vm9, %v4416_v3 }
 0x3bb   : > { %3527 = vmatprep.mubr.msk.f32.mxu1 %vm1039_vm9, %v4406_v58 }
 0x3be   : > { %v4422_v4 = vpop.f32.mrb[28].mxu1  ;;  %3528 = vmatmul.mubr.msk.f32.gmra.mrb[58].mxu1 %vm1039_vm9, %v4412_v0 }
 0x3bf   : > { %v4426_v6 = vpop.f32.mrb[29].mxu1 }
 0x3c0   : > { %v4428_v7 = vpop.f32.mrb[30].mxu1  ;;  %3530 = vmatprep.mubr.msk.f32.mxu1 %vm1039_vm9, %v4426_v6 }
 0x3c1   : > { %v4432_v8 = vpop.f32.mrb[31].mxu1 }
 0x3c2   : > { %3531 = vmatmul.mubr.msk.f32.gmra.mrb[60].mxu1 %vm1039_vm9, %v4432_v8 }
 0x3c3   : > { %3533 = vmatprep.mubr.msk.f32.mxu1 %vm1039_vm9, %v4422_v4 }
 0x3c6   : > { %v3460_v33 = vpop.f32.mrb[32].mxu1  ;;  %3534 = vmatmul.mubr.msk.f32.gmra.mrb[62].mxu1 %vm1039_vm9, %v4428_v7 }
 0x3c7   : > { %v1719_v1 = vadd.f32 %v3460_v33, %v3101_v32  ;;  %v1713_v45 = vpop.f32.mrb[33].mxu1 }
 0x3c8   : > { %v1714_v34 = vadd.f32 %v3101_v32, %v1713_v45 }
 0x3c9   : > { %v1991_v10 = vmul.f32 %v3486_v36, %v1719_v1 }
 0x3ca   : > { %v1990_v35 = vmul.f32 %v1911_v20, %v1714_v34  ;;  %v3463_v11 = vpop.f32.mrb[34].mxu1 }
 0x3cb   : > { %v1729_v12 = vadd.f32 %v3463_v11, %v3101_v32  ;;  %v1723_v48 = vpop.f32.mrb[35].mxu1 }
 0x3cc   : > { %v1724_v43 = vadd.f32 %v3101_v32, %v1723_v48  ;;  %3538 = vmatprep.mubr.msk.f32.mxu1 %vm2202_vm12, %v1990_v35  ;;  %v2445_v35 = vld [vmem:[%s3957_s20 + $0x8] sm:$0xff] }
 0x3cd   : > { %v1993_v46 = vmul.f32 %v4343_v24, %v1729_v12  ;;  %3539 = vmatmul.mubr.msk.f32.vlgmr.msra.gmra.mrb[48].mxu1 %vm2202_vm12, %v1991_v10  ;;  %v2444_v12 = vld [vmem:[%s3957_s20] sm:$0xff] }
 0x3ce   : > { %v1992_v51 = vmul.f32 %v4345_v25, %v1724_v43  ;;  %v3466_v13 = vpop.f32.mrb[36].mxu1 }
 0x3cf   : > { %v1739_v14 = vadd.f32 %v3466_v13, %v3101_v32  ;;  %v1733_v9 = vpop.f32.mrb[37].mxu1 }
 0x3d0   : > { %v1734_v56 = vadd.f32 %v3101_v32, %v1733_v9  ;;  %3541 = vmatprep.mubr.msk.f32.mxu1 %vm2202_vm12, %v1992_v51 }
 0x3d1   : > { %v1995_v49 = vmul.f32 %v4347_v38, %v1739_v14  ;;  %3542 = vmatmul.mubr.msk.f32.gmra.mrb[50].mxu1 %vm2202_vm12, %v1993_v46  ;;  %v2447_v14 = vld [vmem:[%s3957_s20 + $0x18] sm:$0xff] }
 0x3d2   : > { %v1994_v59 = vmul.f32 %v4349_v26, %v1734_v56  ;;  %v3469_v52 = vpop.f32.mrb[38].mxu1 }
 0x3d3   : > { %v1749_v15 = vadd.f32 %v3469_v52, %v3101_v32  ;;  %v1743_v16 = vpop.f32.mrb[39].mxu1 }
 0x3d4   : > { %v1744_v17 = vadd.f32 %v3101_v32, %v1743_v16  ;;  %3544 = vmatprep.mubr.msk.f32.mxu1 %vm2202_vm12, %v1994_v59  ;;  %v2446_v59 = vld [vmem:[%s3957_s20 + $0x10] sm:$0xff] }
 0x3d5   : > { %v1997_v18 = vmul.f32 %v4351_v2, %v1749_v15  ;;  %3545 = vmatmul.mubr.msk.f32.gmra.mrb[52].mxu1 %vm2202_vm12, %v1995_v49 }
 0x3d6   : > { %v1996_v62 = vmul.f32 %v4353_v21, %v1744_v17  ;;  %v3472_v57 = vpop.f32.mrb[40].mxu1 }
 0x3d7   : > { %v1759_v37 = vadd.f32 %v3472_v57, %v3101_v32  ;;  %v1753_v19 = vpop.f32.mrb[41].mxu1 }
 0x3d8   : > { %v1754_v60 = vadd.f32 %v3101_v32, %v1753_v19  ;;  %3547 = vmatprep.mubr.msk.f32.mxu1 %vm2202_vm12, %v1996_v62 }
 0x3d9   : > { %v1999_v5 = vmul.f32 %v4355_v28, %v1759_v37  ;;  %3548 = vmatmul.mubr.msk.f32.gmra.mrb[54].mxu1 %vm2202_vm12, %v1997_v18  ;;  %v2449_v37 = vld [vmem:[%s3957_s20 + $0x28] sm:$0xff] }
 0x3da   : > { %v1998_v63 = vmul.f32 %v4357_v22, %v1754_v60  ;;  %v3475_v36 = vpop.f32.mrb[42].mxu1 }
 0x3db   : > { %v1769_v20 = vadd.f32 %v3475_v36, %v3101_v32  ;;  %v1763_v24 = vpop.f32.mrb[43].mxu1 }
 0x3dc   : > { %v1764_v25 = vadd.f32 %v3101_v32, %v1763_v24  ;;  %3550 = vmatprep.mubr.msk.f32.mxu1 %vm2202_vm12, %v1998_v63  ;;  %v2448_v63 = vld [vmem:[%s3957_s20 + $0x20] sm:$0xff] }
 0x3dd   : > { %v2001_v38 = vmul.f32 %v4359_v23, %v1769_v20  ;;  %3551 = vmatmul.mubr.msk.f32.gmra.mrb[56].mxu1 %vm2202_vm12, %v1999_v5 }
 0x3de   : > { %v2000_v26 = vmul.f32 %v4361_v39, %v1764_v25  ;;  %v3478_v2 = vpop.f32.mrb[44].mxu1 }
 0x3df   : > { %v1779_v21 = vadd.f32 %v3478_v2, %v3101_v32  ;;  %v1773_v47 = vpop.f32.mrb[45].mxu1 }
 0x3e0   : > { %v1774_v28 = vadd.f32 %v3101_v32, %v1773_v47  ;;  %3553 = vmatprep.mubr.msk.f32.mxu1 %vm2202_vm12, %v2000_v26 }
 0x3e1   : > { %v2003_v22 = vmul.f32 %v4363_v40, %v1779_v21  ;;  %3554 = vmatmul.mubr.msk.f32.gmra.mrb[58].mxu1 %vm2202_vm12, %v2001_v38  ;;  %v3797_v40 = vmov 0.0   ;;  %v2451_v21 = vld [vmem:[%s3957_s20 + $0x38] sm:$0xff] }
 0x3e2   : > { %v2002_v33 = vmul.f32 %v4365_v41, %v1774_v28  ;;  %v3481_v1 = vpop.f32.mrb[46].mxu1  ;;  %3608 = vmatprep.subr.bf16.mxu1 %v3797_v40  ;;  %3588 = vmatprep.subr.bf16.mxu0 %v3797_v40 }
 0x3e3   : > { %v1789_v45 = vadd.f32 %v3481_v1, %v3101_v32  ;;  %v1783_v23 = vpop.f32.mrb[47].mxu1 }
 0x3e4   : > { %v1784_v34 = vadd.f32 %v3101_v32, %v1783_v23  ;;  %3556 = vmatprep.mubr.msk.f32.mxu1 %vm2202_vm12, %v2002_v33  ;;  %v2450_v33 = vld [vmem:[%s3957_s20 + $0x30] sm:$0xff] }
 0x3e5   : > { %v2005_v39 = vmul.f32 %v4367_v42, %v1789_v45  ;;  %3557 = vmatmul.mubr.msk.f32.gmra.mrb[60].mxu1 %vm2202_vm12, %v2003_v22 }
 0x3e6   : > { %v2004_v10 = vmul.f32 %v4369_v44, %v1784_v34 }
 0x3e8   : > { %3559 = vmatprep.mubr.msk.f32.mxu1 %vm2202_vm12, %v2004_v10 }
 0x3e9   : > { %3560 = vmatmul.mubr.msk.f32.gmra.mrb[62].mxu1 %vm2202_vm12, %v2005_v39 }
 0x4a0   : > { %v3540_v41 = vpop.f32.mrb[48].mxu1 }
 0x4a1   : > { %vm2397_vm13 = vcmp.ge.f32.partialorder %v3540_v41, 0.0  ;;  %v2413_v32 = vmul.f32 0.2, %v3540_v41  ;;  %v2317_v11 = vpop.f32.mrb[49].mxu1 }
 0x4a2   : > { %vm2396_vm14 = vcmp.ge.f32.partialorder %v2317_v11, 0.0  ;;  %v2412_v42 = vmul.f32 0.2, %v2317_v11 }
 0x4a3   : > { %v2429_v44 = vsel %vm2397_vm13, %v3540_v41, %v2413_v32  ;;  %v2453_v32 = vld [vmem:[%s3957_s20 + $0x48] sm:$0xff] }
 0x4a4   : > { %v2461_v48 = vsub.f32 %v2429_v44, %v2445_v35  ;;  %v2428_v43 = vsel %vm2396_vm14, %v2317_v11, %v2412_v42  ;;  %v3543_v46 = vpop.f32.mrb[50].mxu1  ;;  %v2452_v44 = vld [vmem:[%s3957_s20 + $0x40] sm:$0xff] }
 0x4a5   : > { %v2460_v51 = vsub.f32 %v2428_v43, %v2444_v12  ;;  %vm2399_vm15 = vcmp.ge.f32.partialorder %v3543_v46, 0.0  ;;  %v2415_v13 = vmul.f32 0.2, %v3543_v46  ;;  %v2327_v9 = vpop.f32.mrb[51].mxu1 }
 0x4a6   : > { %v2478_v56 = vmul.f32 1.442695, %v2461_v48  ;;  %vm2398_vm0 = vcmp.ge.f32.partialorder %v2327_v9, 0.0  ;;  %v2414_v49 = vmul.f32 0.2, %v2327_v9 }
 0x4a7   : > { %v2476_v52 = vmul.f32 1.442695, %v2460_v51  ;;  %v2431_v15 = vsel %vm2399_vm15, %v3543_v46, %v2415_v13 }
 0x4a8   : > { %3704 = vpow2.f32 %v2478_v56  ;;  %v2463_v16 = vsub.f32 %v2431_v15, %v2447_v14  ;;  %v2430_v17 = vsel %vm2398_vm0, %v2327_v9, %v2414_v49  ;;  %v3546_v18 = vpop.f32.mrb[52].mxu1  ;;  %vm3798_vm0 = vmmov 0  }
 0x4a9   : > { %3706 = vpow2.f32 %v2476_v52  ;;  %v2462_v62 = vsub.f32 %v2430_v17, %v2446_v59  ;;  %vm2401_vm1 = vcmp.ge.f32.partialorder %v3546_v18, 0.0  ;;  %v2417_v57 = vmul.f32 0.2, %v3546_v18  ;;  %v2337_v19 = vpop.f32.mrb[53].mxu1  ;;  %v2455_v59 = vld [vmem:[%s3957_s20 + $0x58] sm:$0xff]  ;;  %3624 = vmatprep.mubr.msk.bf16.mxu1 %vm3798_vm0, %v3797_v40 }
 0x4aa   : > { %v2482_v60 = vmul.f32 1.442695, %v2463_v16  ;;  %vm2400_vm2 = vcmp.ge.f32.partialorder %v2337_v19, 0.0  ;;  %v2416_v5 = vmul.f32 0.2, %v2337_v19 }
 0x4ab   : > { %v2480_v36 = vmul.f32 1.442695, %v2462_v62  ;;  %v2433_v20 = vsel %vm2401_vm1, %v3546_v18, %v2417_v57  ;;  %v2454_v18 = vld [vmem:[%s3957_s20 + $0x50] sm:$0xff] }
 0x4ac   : > { %3708 = vpow2.f32 %v2482_v60  ;;  %v2465_v24 = vsub.f32 %v2433_v20, %v2449_v37  ;;  %v2432_v25 = vsel %vm2400_vm2, %v2337_v19, %v2416_v5  ;;  %v3549_v38 = vpop.f32.mrb[54].mxu1 }
 0x4ad   : > { %3710 = vpow2.f32 %v2480_v36  ;;  %v2464_v26 = vsub.f32 %v2432_v25, %v2448_v63  ;;  %vm2403_vm3 = vcmp.ge.f32.partialorder %v3549_v38, 0.0  ;;  %v2419_v2 = vmul.f32 0.2, %v3549_v38  ;;  %v2347_v47 = vpop.f32.mrb[55].mxu1 }
 0x4ae   : > { %v2486_v28 = vmul.f32 1.442695, %v2465_v24  ;;  %vm2402_vm4 = vcmp.ge.f32.partialorder %v2347_v47, 0.0  ;;  %v2418_v22 = vmul.f32 0.2, %v2347_v47  ;;  %v2457_v24 = vld [vmem:[%s3957_s20 + $0x68] sm:$0xff] }
 0x4af   : > { %v2484_v1 = vmul.f32 1.442695, %v2464_v26  ;;  %v2435_v45 = vsel %vm2403_vm3, %v3549_v38, %v2419_v2 }
 0x4b0   : > { %3712 = vpow2.f32 %v2486_v28  ;;  %v2467_v23 = vsub.f32 %v2435_v45, %v2451_v21  ;;  %v2434_v34 = vsel %vm2402_vm4, %v2347_v47, %v2418_v22  ;;  %v3552_v39 = vpop.f32.mrb[56].mxu1  ;;  %v2456_v21 = vld [vmem:[%s3957_s20 + $0x60] sm:$0xff] }
 0x4b1   : > { %3714 = vpow2.f32 %v2484_v1  ;;  %v2466_v10 = vsub.f32 %v2434_v34, %v2450_v33  ;;  %vm2405_vm6 = vcmp.ge.f32.partialorder %v3552_v39, 0.0  ;;  %v2421_v41 = vmul.f32 0.2, %v3552_v39  ;;  %v2357_v35 = vpop.f32.mrb[57].mxu1 }
 0x4b2   : > { %v3705_v11 = vpop.eup %3704  ;;  %v2490_v42 = vmul.f32 1.442695, %v2467_v23  ;;  %vm2404_vm8 = vcmp.ge.f32.partialorder %v2357_v35, 0.0  ;;  %v2420_v12 = vmul.f32 0.2, %v2357_v35 }
 0x4b3   : > { %v3707_v48 = vpop.eup %3706  ;;  %v2488_v43 = vmul.f32 1.442695, %v2466_v10  ;;  %v2437_v46 = vsel %vm2405_vm6, %v3552_v39, %v2421_v41  ;;  %v2459_v10 = vld [vmem:[%s3957_s20 + $0x78] sm:$0xff] }
 0x4b4   : > { %3716 = vpow2.f32 %v2490_v42  ;;  %v2469_v51 = vsub.f32 %v2437_v46, %v2453_v32  ;;  %v2436_v13 = vsel %vm2404_vm8, %v2357_v35, %v2420_v12  ;;  %v3555_v14 = vpop.f32.mrb[58].mxu1  ;;  %3564 = vmatprep.mubr.msk.f32.mxu0 %vm2509_vm5, %v3707_v48  ;;  %v2787_v9 = vpack.c.bf16 %v3705_v11, %v3707_v48  ;;  %v2458_v42 = vld [vmem:[%s3957_s20 + $0x70] sm:$0xff] }
 0x4b5   : > { %3718 = vpow2.f32 %v2488_v43  ;;  %v2468_v56 = vsub.f32 %v2436_v13, %v2452_v44  ;;  %vm2407_vm10 = vcmp.ge.f32.partialorder %v3555_v14, 0.0  ;;  %v2423_v49 = vmul.f32 0.2, %v3555_v14  ;;  %v2367_v52 = vpop.f32.mrb[59].mxu1  ;;  %3565 = vmatmul.mubr.msk.f32.vlgmr.msra.gmra.mrb[64].mxu0 %vm2509_vm5, %v3705_v11 }
 0x4b6   : > { %v3709_v15 = vpop.eup %3708  ;;  %v2494_v16 = vmul.f32 1.442695, %v2469_v51  ;;  %vm2406_vm11 = vcmp.ge.f32.partialorder %v2367_v52, 0.0  ;;  %v2422_v17 = vmul.f32 0.2, %v2367_v52  ;;  %3609 = vmatpush3.bf16.msra.mxu1 %v2787_v9 }
 0x4b7   : > { %v3711_v62 = vpop.eup %3710  ;;  %v2492_v57 = vmul.f32 1.442695, %v2468_v56  ;;  %v2439_v37 = vsel %vm2407_vm10, %v3555_v14, %v2423_v49  ;;  %3610 = vmatprep.subr.bf16.mxu1 %v3797_v40 }
 0x4b8   : > { %3720 = vpow2.f32 %v2494_v16  ;;  %v2471_v19 = vsub.f32 %v2439_v37, %v2455_v59  ;;  %v2438_v60 = vsel %vm2406_vm11, %v2367_v52, %v2422_v17  ;;  %v3558_v5 = vpop.f32.mrb[60].mxu1  ;;  %3567 = vmatprep.mubr.msk.f32.mxu0 %vm2509_vm5, %v3711_v62  ;;  %v2788_v63 = vpack.c.bf16 %v3709_v15, %v3711_v62 }
 0x4b9   : > { %3722 = vpow2.f32 %v2492_v57  ;;  %v2470_v36 = vsub.f32 %v2438_v60, %v2454_v18  ;;  %vm2409_vm12 = vcmp.ge.f32.partialorder %v3558_v5, 0.0  ;;  %v2425_v20 = vmul.f32 0.2, %v3558_v5  ;;  %v2377_v25 = vpop.f32.mrb[61].mxu1  ;;  %3568 = vmatmul.mubr.msk.f32.gmra.mrb[66].mxu0 %vm2509_vm5, %v3709_v15  ;;  %v3703_v60 = vld [vmem:[%s669_s28] sm:$0xff]  }
 0x4ba   : > { %v3713_v38 = vpop.eup %3712  ;;  %v2498_v26 = vmul.f32 1.442695, %v2471_v19  ;;  %vm2408_vm13 = vcmp.ge.f32.partialorder %v2377_v25, 0.0  ;;  %v2424_v2 = vmul.f32 0.2, %v2377_v25  ;;  %3611 = vmatpush3.bf16.msra.mxu1 %v2788_v63 }
 0x4bb   : > { %v3715_v47 = vpop.eup %3714  ;;  %v2496_v28 = vmul.f32 1.442695, %v2470_v36  ;;  %v2441_v22 = vsel %vm2409_vm12, %v3558_v5, %v2425_v20  ;;  %3612 = vmatprep.subr.bf16.mxu1 %v3797_v40 }
 0x4bc   : > { %3724 = vpow2.f32 %v2498_v26  ;;  %v2473_v33 = vsub.f32 %v2441_v22, %v2457_v24  ;;  %v2440_v1 = vsel %vm2408_vm13, %v2377_v25, %v2424_v2  ;;  %v3561_v45 = vpop.f32.mrb[62].mxu1  ;;  %3570 = vmatprep.mubr.msk.f32.mxu0 %vm2509_vm5, %v3715_v47  ;;  %v2789_v23 = vpack.c.bf16 %v3713_v38, %v3715_v47 }
 0x4bd   : > { %3726 = vpow2.f32 %v2496_v28  ;;  %v2472_v34 = vsub.f32 %v2440_v1, %v2456_v21  ;;  %vm2411_vm14 = vcmp.ge.f32.partialorder %v3561_v45, 0.0  ;;  %v2427_v39 = vmul.f32 0.2, %v3561_v45  ;;  %v2387_v41 = vpop.f32.mrb[63].mxu1  ;;  %3571 = vmatmul.mubr.msk.f32.gmra.mrb[68].mxu0 %vm2509_vm5, %v3713_v38 }
 0x4be   : > { %v3717_v32 = vpop.eup %3716  ;;  %v2502_v35 = vmul.f32 1.442695, %v2473_v33  ;;  %vm2410_vm15 = vcmp.ge.f32.partialorder %v2387_v41, 0.0  ;;  %v2426_v11 = vmul.f32 0.2, %v2387_v41  ;;  %3613 = vmatpush3.bf16.msra.mxu1 %v2789_v23 }
 0x4bf   : > { %v3719_v12 = vpop.eup %3718  ;;  %v2500_v44 = vmul.f32 1.442695, %v2472_v34  ;;  %v2443_v48 = vsel %vm2411_vm14, %v3561_v45, %v2427_v39  ;;  %3614 = vmatprep.subr.bf16.mxu1 %v3797_v40 }
 0x4c0   : > { %3728 = vpow2.f32 %v2502_v35  ;;  %v2475_v43 = vsub.f32 %v2443_v48, %v2459_v10  ;;  %v2442_v46 = vsel %vm2410_vm15, %v2387_v41, %v2426_v11  ;;  %3573 = vmatprep.mubr.msk.f32.mxu0 %vm2509_vm5, %v3719_v12  ;;  %v2790_v51 = vpack.c.bf16 %v3717_v32, %v3719_v12 }
 0x4c1   : > { %3730 = vpow2.f32 %v2500_v44  ;;  %v2474_v13 = vsub.f32 %v2442_v46, %v2458_v42  ;;  %3574 = vmatmul.mubr.msk.f32.gmra.mrb[70].mxu0 %vm2509_vm5, %v3717_v32 }
 0x4c2   : > { %v3721_v14 = vpop.eup %3720  ;;  %v2506_v9 = vmul.f32 1.442695, %v2475_v43  ;;  %3615 = vmatpush3.bf16.msra.mxu1 %v2790_v51 }
 0x4c3   : > { %v3723_v56 = vpop.eup %3722  ;;  %v2504_v49 = vmul.f32 1.442695, %v2474_v13  ;;  %3616 = vmatprep.subr.bf16.mxu1 %v3797_v40  ;;  %v2786_v13 = vld [vmem:[#allocation2 + $0x8] sm:$0xff] }
 0x4c4   : > { %3732 = vpow2.f32 %v2506_v9  ;;  %3576 = vmatprep.mubr.msk.f32.mxu0 %vm2509_vm5, %v3723_v56  ;;  %v2791_v59 = vpack.c.bf16 %v3721_v14, %v3723_v56  ;;  %v2725_v56 = vld [vmem:[#allocation4 + $0x8] sm:$0xff] }
 0x4c5   : > { %3734 = vpow2.f32 %v2504_v49  ;;  %3577 = vmatmul.mubr.msk.f32.gmra.mrb[72].mxu0 %vm2509_vm5, %v3721_v14 }
 0x4c6   : > { %v3725_v52 = vpop.eup %3724  ;;  %3617 = vmatpush3.bf16.msra.mxu1 %v2791_v59 }
 0x4c7   : > { %v3727_v15 = vpop.eup %3726  ;;  %3618 = vmatprep.subr.bf16.mxu1 %v3797_v40 }
 0x4c8   : > { %3579 = vmatprep.mubr.msk.f32.mxu0 %vm2509_vm5, %v3727_v15  ;;  %v2792_v16 = vpack.c.bf16 %v3725_v52, %v3727_v15 }
 0x4c9   : > { %3580 = vmatmul.mubr.msk.f32.gmra.mrb[74].mxu0 %vm2509_vm5, %v3725_v52 }
 0x4ca   : > { %v3729_v17 = vpop.eup %3728  ;;  %3619 = vmatpush3.bf16.msra.mxu1 %v2792_v16  ;;  %v2846_v16 = vld [vmem:[%s4609_s18] sm:$0x3] (!%p3185_p10) }
 0x4cb   : > { %v3731_v18 = vpop.eup %3730  ;;  %3620 = vmatprep.subr.bf16.mxu1 %v3797_v40 }
 0x4cc   : > { %3582 = vmatprep.mubr.msk.f32.mxu0 %vm2509_vm5, %v3731_v18  ;;  %v2793_v62 = vpack.c.bf16 %v3729_v17, %v3731_v18 }
 0x4cd   : > { %3583 = vmatmul.mubr.msk.f32.gmra.mrb[76].mxu0 %vm2509_vm5, %v3729_v17 }
 0x4ce   : > { %v3733_v57 = vpop.eup %3732  ;;  %3621 = vmatpush3.bf16.msra.mxu1 %v2793_v62 }
 0x4cf   : > { %v3735_v37 = vpop.eup %3734  ;;  %3622 = vmatprep.subr.bf16.mxu1 %v3797_v40 }
 0x4d0   : > { %3585 = vmatprep.mubr.msk.f32.mxu0 %vm2509_vm5, %v3735_v37  ;;  %v2794_v19 = vpack.c.bf16 %v3733_v57, %v3735_v37 }
 0x4d1   : > { %3586 = vmatmul.mubr.msk.f32.gmra.mrb[78].mxu0 %vm2509_vm5, %v3733_v57 }
 0x4d2   : > { %3623 = vmatpush3.bf16.msra.mxu1 %v2794_v19  ;;  %3604 = vmatprep.mubr.msk.bf16.mxu0 %vm3798_vm0, %v3797_v40 }
 0x4d5   : > { %3625 = vmatmul.mubr.bf16.vlgmr.msra.gmra.mrb[64].mxu1 %v3703_v60 }
 0x588   : > { %v3566_v5 = vpop.f32.mrb[64].mxu0 }
 0x589   : > { %v2707_v63 = vmul.f32 %v3566_v5, %v4384_v54  ;;  %v2627_v36 = vpop.f32.mrb[65].mxu0  ;;  %v3189_v5 = vld [vmem:[%s4637_s1] ss:$0 sm:$0xff] (!%p3185_p10) }
 0x58a   : > { %v2706_v20 = vmul.f32 %v2627_v36, %v4378_v53 }
 0x58c   : > { %v2726_v24 = vpack.c.bf16 %v2707_v63, %v2706_v20  ;;  %v3569_v25 = vpop.f32.mrb[66].mxu0 }
 0x58d   : > { %v2709_v38 = vmul.f32 %v3569_v25, %v4380_v27  ;;  %v2637_v26 = vpop.f32.mrb[67].mxu0 }
 0x58e   : > { %v2708_v2 = vmul.f32 %v4376_v50, %v2637_v26  ;;  %3589 = vmatpush3.bf16.msra.mxu0 %v2726_v24 }
 0x58f   : > { %3590 = vmatprep.subr.bf16.mxu0 %v3797_v40 }
 0x590   : > { %v2727_v21 = vpack.c.bf16 %v2709_v38, %v2708_v2  ;;  %v3572_v47 = vpop.f32.mrb[68].mxu0 }
 0x591   : > { %v2711_v28 = vmul.f32 %v3572_v47, %v4400_v31  ;;  %v2647_v22 = vpop.f32.mrb[69].mxu0 }
 0x592   : > { %v2710_v54 = vmul.f32 %v2647_v22, %v4394_v29  ;;  %3591 = vmatpush3.bf16.msra.mxu0 %v2727_v21 }
 0x593   : > { %3592 = vmatprep.subr.bf16.mxu0 %v3797_v40 }
 0x594   : > { %v2728_v53 = vpack.c.bf16 %v2711_v28, %v2710_v54  ;;  %v3575_v33 = vpop.f32.mrb[70].mxu0 }
 0x595   : > { %v2713_v27 = vmul.f32 %v3575_v33, %v4396_v30  ;;  %v2657_v1 = vpop.f32.mrb[71].mxu0 }
 0x596   : > { %v2712_v50 = vmul.f32 %v4390_v55, %v2657_v1  ;;  %3593 = vmatpush3.bf16.msra.mxu0 %v2728_v53 }
 0x597   : > { %3594 = vmatprep.subr.bf16.mxu0 %v3797_v40 }
 0x598   : > { %v2729_v45 = vpack.c.bf16 %v2713_v27, %v2712_v50  ;;  %v3578_v23 = vpop.f32.mrb[72].mxu0 }
 0x599   : > { %v2715_v31 = vmul.f32 %v3578_v23, %v4416_v3  ;;  %v2667_v34 = vpop.f32.mrb[73].mxu0 }
 0x59a   : > { %v2714_v29 = vmul.f32 %v2667_v34, %v4410_v61  ;;  %3595 = vmatpush3.bf16.msra.mxu0 %v2729_v45 }
 0x59b   : > { %3596 = vmatprep.subr.bf16.mxu0 %v3797_v40 }
 0x59c   : > { %v2730_v39 = vpack.c.bf16 %v2715_v31, %v2714_v29  ;;  %v3581_v10 = vpop.f32.mrb[74].mxu0 }
 0x59d   : > { %v2717_v30 = vmul.f32 %v3581_v10, %v4412_v0  ;;  %v2677_v41 = vpop.f32.mrb[75].mxu0 }
 0x59e   : > { %v2716_v55 = vmul.f32 %v4406_v58, %v2677_v41  ;;  %3597 = vmatpush3.bf16.msra.mxu0 %v2730_v39 }
 0x59f   : > { %3598 = vmatprep.subr.bf16.mxu0 %v3797_v40 }
 0x5a0   : > { %v2731_v32 = vpack.c.bf16 %v2717_v30, %v2716_v55  ;;  %v3584_v35 = vpop.f32.mrb[76].mxu0 }
 0x5a1   : > { %v2719_v3 = vmul.f32 %v3584_v35, %v4432_v8  ;;  %v2687_v11 = vpop.f32.mrb[77].mxu0  ;;  %v2785_v8 = vld [vmem:[#allocation2] sm:$0xff] }
 0x5a2   : > { %v2718_v61 = vmul.f32 %v2687_v11, %v4426_v6  ;;  %3599 = vmatpush3.bf16.msra.mxu0 %v2731_v32 }
 0x5a3   : > { %3600 = vmatprep.subr.bf16.mxu0 %v3797_v40 }
 0x5a4   : > { %v2732_v42 = vpack.c.bf16 %v2719_v3, %v2718_v61  ;;  %v3587_v12 = vpop.f32.mrb[78].mxu0 }
 0x5a5   : > { %v2721_v0 = vmul.f32 %v3587_v12, %v4428_v7  ;;  %v2697_v44 = vpop.f32.mrb[79].mxu0  ;;  %v2724_v7 = vld [vmem:[#allocation4] sm:$0xff] }
 0x5a6   : > { %v2720_v58 = vmul.f32 %v4422_v4, %v2697_v44  ;;  %3601 = vmatpush3.bf16.msra.mxu0 %v2732_v42 }
 0x5a7   : > { %3602 = vmatprep.subr.bf16.mxu0 %v3797_v40 }
 0x5a8   : > { %v2733_v48 = vpack.c.bf16 %v2721_v0, %v2720_v58  ;;  %v2829_v43 = vpop.f32.mrb[64].mxu1 }
 0x5a9   : > { %v2836_v46 = vadd.f32 %v2829_v43, %v2785_v8  ;;  %v3626_v6 = vpop.f32.mrb[65].mxu1 }
 0x5aa   : > { %3603 = vmatpush3.bf16.msra.mxu0 %v2733_v48  ;;  %v2832_v51 = vpop.f32.mrb[66].mxu1 }
 0x5ab   : > { %2838 = vst.msk [vmem:[#allocation2] sm:$0xff] %vm2509_vm5, %v2836_v46  ;;  %v3627_v14 = vpop.f32.mrb[67].mxu1  ;;  %v2837_v9 = vadd.f32 %v2832_v51, %v2786_v13  ;;  %3628 = vmatprep.subr.msk.mxu0 (!%p3185_p10), %vm1187_vm7, %v2846_v16 }
 0x5ad   : > { %3605 = vmatmul.mubr.bf16.vlgmr.msra.gmra.mrb[80].mxu0 %v3703_v60  ;;  %2839 = vst.msk [vmem:[#allocation2 + $0x8] sm:$0xff] %vm2509_vm5, %v2837_v9 }
 0x5ae   : > { %3629 = vmatpush3.msk.msra.mxu0 (!%p3185_p10), %vm1187_vm7, %v2846_v16 }
 0x5b2   : > { %v2844_v17 = vld [vmem:[#allocation2] sm:$0xff] (!%p3185_p10) }
 0x5b3   : > { %3630 = vmatprep.mubr.msk.f32.mxu0 (!%p3185_p10), %vm2509_vm5, %v2844_v17 }
 0x5b4   : > { %v2845_v18 = vld [vmem:[#allocation2 + $0x8] sm:$0xff] (!%p3185_p10) }
 0x5b5   : > { %3631 = vmatmul.mubr.msk.f32.vlgmr.msra.gmra.mrb[0].mxu0 (!%p3185_p10), %vm2509_vm5, %v2845_v18 }
 0x67f   : > { %2843 = sbr.rel (%p3185_p10) target bundleno = 1690 (0x69a), region = 153 }
 0x680   : > { %v2774_v4 = vpop.f32.mrb[80].mxu0 }
 0x681   : > { %v2781_v49 = vadd.f32 %v2774_v4, %v2724_v7  ;;  %v3606_v40 = vpop.f32.mrb[81].mxu0 }
 0x682   : > { %v2777_v59 = vpop.f32.mrb[82].mxu0 }
 0x683   : > { %2783 = vst.msk [vmem:[#allocation4] sm:$0xff] %vm1039_vm9, %v2781_v49  ;;  %v2782_v52 = vadd.f32 %v2777_v59, %v2725_v56  ;;  %v3607_v15 = vpop.f32.mrb[83].mxu0 }
 0x685   : > { %2784 = vst.msk [vmem:[#allocation4 + $0x8] sm:$0xff] %vm1039_vm9, %v2782_v52 }
 0x688   : > { %v3632_v62 = vpop.f32.mrb[0].mxu0 }
 0x689   : > { %3736 = vrcp.f32 %v3632_v62  ;;  %v2922_v57 = vpop.f32.mrb[1].mxu0 }
 0x68a   : > { %3738 = vrcp.f32 %v2922_v57  ;;  %v2931_v19 = vld [vmem:[#allocation4] sm:$0xff] }
 0x68c   : > { %v2932_v37 = vld [vmem:[#allocation4 + $0x8] sm:$0xff] }
 0x693   : > { %v3737_v60 = vpop.eup %3736 }
 0x694   : > { %v3739_v63 = vpop.eup %3738  ;;  %v2936_v36 = vmul.f32 %v3737_v60, %v2932_v37 }
 0x695   : > { %v2935_v20 = vmul.f32 %v3739_v63, %v2931_v19 }
 0x696   : > { %v2945_v24 = vadd.f32 %v3189_v5, %v2936_v36 }
 0x697   : > { %v2944_v25 = vadd.f32 %v3189_v5, %v2935_v20 }
 0x698   : > { %2947 = vst.msk [vmem:[#allocation4 + $0x8] sm:$0xff] %vm1039_vm9, %v2945_v24 }
 0x699   : > { %2946 = vst.msk [vmem:[#allocation4] sm:$0xff] %vm1039_vm9, %v2944_v25 }
 0x69a PF: > { %p3664_p11 = scmp.eq.s32.totalorder %s3925_s27, 2  ;;  %s3799_s24 = smov [#allocation4]  }
 0x69b   : > { %s2954_s26 = sshll.u32 %s3799_s24, 4  ;;  %s2955_s26 = int_to_ptr.vmem [resolvable:$true] %s2954_s26 }
 0x69c   : > { %s3740_s2 = scalar_lea.vmem %s2955_s26, 256  ;;  %p3747_p1 = scmp.lt.s32.totalorder %s2955_s26, %s2955_s26 }
 0x69d   : > { %p3741_p12 = scmp.ne.s32.totalorder %s2955_s26, %s3740_s2  ;;  %p3748_p2 = scmp.lt.s32.totalorder %s3740_s2, %s3740_s2 }
 0x69f   : > { %p3742_p13 = pnand %p3741_p12, %p3664_p11  ;;  %p3749_p3 = por %p3748_p2, %p3747_p1 }
 0x6a1   : > { %p3743_p0 = pneg %p3742_p13 }
 0x6a3   : > { %p3750_p4 = pnand %p3749_p3, %p3743_p0 }
 0x6a5   : > { %3753 = shalt.err (!%p3750_p4)
}
 0x6a6   : > { %s4638_s22 = sld [smem:[#allocation18_spill]] }
 0x6ac   : > { %s3754_s5 = scalar_lea.hbm %s4638_s22, 256 }
 0x6ad   : > { %p3755_p5 = scmp.ne.s32.totalorder %s4638_s22, %s3754_s5  ;;  %p3760_p8 = scmp.lt.u32.totalorder %s3754_s5, %s4638_s22 }
 0x6af   : > { %p3756_p6 = pnand %p3755_p5, %p3664_p11 }
 0x6b1   : > { %p3757_p7 = pneg %p3756_p6 }
 0x6b3   : > { %p3762_p9 = pnand %p3760_p8, %p3757_p7 }
 0x6b5   : > { %3765 = shalt.err (!%p3762_p9)
}
 0x6b6   : > { %s3800_s20 = smov 128   ;;  %s3801_s4 = smov 8  }
 0x6b7   : > { %3661 = dma.vmem_to_hbm [thread:$0]  (%p3664_p11), %s2955_s26, 256, %s4638_s22, [#allocation5], %s3800_s20, %s3800_s20, %s3801_s4  }
 0x6b8   : > { %3779 = dma.done.wait (%p3664_p11), [#allocation5], 256  }
 0x6b9   : > { %3781 = vsyncadd (%p3664_p11), [#allocation5], 4294967040 }
 0x6ba PF: > { %s4639_s26 = sld [smem:[#allocation8_spill]]  ;;  %s4640_s2 = sld [smem:[#allocation7_spill]] }
 0x6bb   : > { %s4641_s25 = sld [smem:[#allocation9_spill]] }
 0x6c0   : > { %p29_p10 = scmp.ge.s32.totalorder %s4639_s26, 5  }
 0x6c2   :  { %31 = sbr.rel (!%p29_p10) target bundleno = 12 (0xc), region = 194 }
 0x6c9   :  { %2970 = vsyncpa [#allocation5], 1 }
 0x6ca   :  { %2972 = vsyncpa [#allocation5 + $0x1], 1 }

</bundles_post_ra>
